<compile_context>
chip_gen: v7x
topology: tpu7x:2x2x1
jax: 0.10.0
libtpu: 0.0.40
codegen_flags: <defaults>
</compile_context>

<pallas_src>
import jax
import jax.numpy as jnp
from jax.experimental import pallas as pl
from jax.experimental.pallas import tpu as pltpu

H_LSTM = 64   # LSTM hidden size
C1 = 64       # conv1 out channels
C2 = 32       # conv2 out channels / LSTM input size


def cnn_lstm_kernel(x_ref, w1_ref, b1_ref, w2c_ref, b2_ref,
                    wih_ref, whh_ref, bl_ref,
                    wfc1_ref, bfc1_ref, wfc2_ref, bfc2_ref,
                    out_ref, h1p_sc, gx_sc):
    H = H_LSTM
    Bb = out_ref.shape[1]          # batch block size (static)
    LB = gx_sc.shape[0]            # L * Bb (time-major flattened rows, static)
    L = LB // Bb                   # number of time steps (static)

    # ---- conv1 (1 -> 64, k=3, pad=1) + relu --------------------------------
    # Input rows are (t, b) time-major and already zero padded by one time
    # step (Bb rows) on each side, so the 3 taps are static row windows.
    xp = x_ref[0]                                        # (LB + 2*Bb, 1)
    w1 = w1_ref[...]                                     # (3, 64): w1[k, o]
    h1 = (xp[0:LB, :] * w1[0:1, :]                       # tap x[t-1]
          + xp[Bb:Bb + LB, :] * w1[1:2, :]               # tap x[t]
          + xp[2 * Bb:2 * Bb + LB, :] * w1[2:3, :]       # tap x[t+1]
          + b1_ref[...])
    h1 = jnp.maximum(h1, 0.0)                            # (LB, 64)

    # ---- conv2 (64 -> 32, k=3, pad=1) + relu, three taps fused -------------
    # Zero-padded scratch so the taps are again static, sublane-aligned reads.
    h1p_sc[pl.ds(0, Bb), :] = jnp.zeros((Bb, C1), jnp.float32)        # t = -1 pad
    h1p_sc[pl.ds(LB + Bb, Bb), :] = jnp.zeros((Bb, C1), jnp.float32)  # t = L pad
    h1p_sc[pl.ds(Bb, LB), :] = h1
    h1_cat = jnp.concatenate(
        [h1p_sc[pl.ds(0, LB), :],            # h1[t-1]
         h1p_sc[pl.ds(Bb, LB), :],           # h1[t]
         h1p_sc[pl.ds(2 * Bb, LB), :]],      # h1[t+1]
        axis=1)                                          # (LB, 192)
    h2 = jnp.maximum(
        jnp.dot(h1_cat, w2c_ref[...], preferred_element_type=jnp.float32)
        + b2_ref[...], 0.0)                              # (LB, 32)

    # ---- LSTM (32 -> 64): input projection hoisted out of the recurrence ---
    gx_sc[...] = (jnp.dot(h2, wih_ref[...], preferred_element_type=jnp.float32)
                  + bl_ref[...])                         # (LB, 256), gates [i,f,o,g]
    whh = whh_ref[...]                                   # (64, 256)

    h = jnp.zeros((Bb, H), jnp.float32)
    c = jnp.zeros((Bb, H), jnp.float32)
    # L is a small static constant -> fully unrolled recurrence; slices below
    # are static so they lower to aligned vector loads.
    for t in range(L):
        g_all = (gx_sc[pl.ds(t * Bb, Bb), :]
                 + jnp.dot(h, whh, preferred_element_type=jnp.float32))  # (Bb, 256)
        sig = jax.nn.sigmoid(g_all[:, 0:3 * H])          # contiguous [i, f, o] gates
        g_act = jnp.tanh(g_all[:, 3 * H:4 * H])          # g gate
        c = sig[:, H:2 * H] * c + sig[:, 0:H] * g_act
        h = sig[:, 2 * H:3 * H] * jnp.tanh(c)

    # ---- dropout(0.5) is identity at inference; fc1 + relu; fc2 ------------
    z1 = jnp.maximum(jnp.dot(h, wfc1_ref[...], preferred_element_type=jnp.float32)
                     + bfc1_ref[...], 0.0)               # (Bb, 32)
    out_ref[0] = (jnp.dot(z1, wfc2_ref[...], preferred_element_type=jnp.float32)
                  + bfc2_ref[...])                       # (Bb, 1)


def cnn_lstm_forward(x, p, b_blk=None):
    """x: (B, 1, L) float32 (PyTorch NCL). Returns (B, 1)."""
    B, _, L = x.shape
    H = H_LSTM
    if b_blk is None:
        # Adaptive batch block: multiple of 8, capped so VMEM scratch stays small.
        b_blk = min(64, max(8, 8 * (-(-B // 8))))
    G = pl.cdiv(B, b_blk)
    B_pad = G * b_blk
    LB = L * b_blk

    # time-major, batch-blocked input: row index = t * b_blk + b_local,
    # plus one time step (b_blk rows) of zero padding on each side.
    xs = x[:, 0, :].astype(jnp.float32)                  # (B, L)
    xs = jnp.pad(xs, ((0, B_pad - B), (0, 0)))           # (B_pad, L)
    xs = xs.reshape(G, b_blk, L).transpose(0, 2, 1)      # (G, L, b_blk)
    xs = xs.reshape(G, LB, 1)
    xs = jnp.pad(xs, ((0, 0), (b_blk, b_blk), (0, 0)))   # (G, LB + 2*b_blk, 1)

    # conv2 weight fused over (tap, in_channel): rows = k*64 + c
    w2_cat = p["w2_k"].reshape(3 * C1, C2)

    def reorder(w):  # LSTM gate columns [i, f, g, o] -> [i, f, o, g]
        return jnp.concatenate(
            [w[..., :2 * H], w[..., 3 * H:], w[..., 2 * H:3 * H]], axis=-1)

    wih = reorder(p["wih_T"])                            # (32, 256)
    whh = reorder(p["whh_T"])                            # (64, 256)
    bl = reorder(p["b_lstm"]).reshape(1, 4 * H)

    b1 = p["b1"].reshape(1, C1)
    b2 = p["b2"].reshape(1, C2)
    bfc1 = p["bfc1"].reshape(1, 32)
    bfc2 = p["bfc2"].reshape(1, 1)

    out = pl.pallas_call(
        cnn_lstm_kernel,
        out_shape=jax.ShapeDtypeStruct((G, b_blk, 1), jnp.float32),
        grid_spec=pltpu.PrefetchScalarGridSpec(
            num_scalar_prefetch=0,
            grid=(G,),
            in_specs=[
                pl.BlockSpec((1, LB + 2 * b_blk, 1), lambda g: (g, 0, 0)),  # x (padded)
                pl.BlockSpec((3, C1), lambda g: (0, 0)),                    # conv1 weight
                pl.BlockSpec((1, C1), lambda g: (0, 0)),                    # conv1 bias
                pl.BlockSpec((3 * C1, C2), lambda g: (0, 0)),               # conv2 weight (fused)
                pl.BlockSpec((1, C2), lambda g: (0, 0)),                    # conv2 bias
                pl.BlockSpec((C2, 4 * H), lambda g: (0, 0)),                # W_ih.T (reordered)
                pl.BlockSpec((H, 4 * H), lambda g: (0, 0)),                 # W_hh.T (reordered)
                pl.BlockSpec((1, 4 * H), lambda g: (0, 0)),                 # lstm bias
                pl.BlockSpec((H, 32), lambda g: (0, 0)),                    # fc1 W.T
                pl.BlockSpec((1, 32), lambda g: (0, 0)),                    # fc1 bias
                pl.BlockSpec((32, 1), lambda g: (0, 0)),                    # fc2 W.T
                pl.BlockSpec((1, 1), lambda g: (0, 0)),                     # fc2 bias
            ],
            out_specs=pl.BlockSpec((1, b_blk, 1), lambda g: (g, 0, 0)),
            scratch_shapes=[
                pltpu.VMEM((LB + 2 * b_blk, C1), jnp.float32),   # zero-padded conv1 output
                pltpu.VMEM((LB, 4 * H), jnp.float32),            # hoisted LSTM input projection
            ],
        ),
        compiler_params=pltpu.CompilerParams(dimension_semantics=("parallel",)),
    )(xs, p["w1_k"], b1, w2_cat, b2, wih, whh, bl,
      p["wfc1_T"], bfc1, p["wfc2_T"], bfc2)
    return out.reshape(B_pad, 1)[:B]                     # (B, 1)


def reference_forward(x, p):
    """Pure-JAX reference mirroring the PyTorch forward exactly."""
    B, _, L = x.shape
    H = H_LSTM
    xs = x[:, 0, :]                                                 # (B, L)
    xp = jnp.pad(xs, ((0, 0), (1, 1)))                              # (B, L+2)
    h1 = p["b1"][None, None, :]
    for k in range(3):
        h1 = h1 + xp[:, k:k + L, None] * p["w1_k"][k][None, None, :]
    h1 = jnp.maximum(h1, 0.0)                                       # (B, L, 64)
    h1p = jnp.pad(h1, ((0, 0), (1, 1), (0, 0)))
    h2 = p["b2"][None, None, :]
    for k in range(3):
        h2 = h2 + jnp.einsum("blc,co->blo", h1p[:, k:k + L, :], p["w2_k"][k])
    h2 = jnp.maximum(h2, 0.0)                                       # (B, L, 32)

    def step(carry, xt):
        h, c = carry
        g = xt @ p["wih_T"] + h @ p["whh_T"] + p["b_lstm"]
        i_g = jax.nn.sigmoid(g[:, :H])
        f_g = jax.nn.sigmoid(g[:, H:2 * H])
        g_g = jnp.tanh(g[:, 2 * H:3 * H])
        o_g = jax.nn.sigmoid(g[:, 3 * H:])
        c = f_g * c + i_g * g_g
        h = o_g * jnp.tanh(c)
        return (h, c), None

    init = (jnp.zeros((B, H), jnp.float32), jnp.zeros((B, H), jnp.float32))
    (h_last, _), _ = jax.lax.scan(step, init, jnp.swapaxes(h2, 0, 1))
    z1 = jnp.maximum(h_last @ p["wfc1_T"] + p["bfc1"], 0.0)
    return z1 @ p["wfc2_T"] + p["bfc2"]                             # (B, 1)


if __name__ == "__main__":
    B, L = 2, 16          # input_dim = 16
    key = jax.random.PRNGKey(0)
    ks = jax.random.split(key, 12)

    def rnd(k, shape, scale=0.1):
        return scale * jax.random.normal(k, shape, dtype=jnp.float32)

    params = {
        "w1_k":  rnd(ks[0], (3, C1)),            # = conv1.weight[o,0,k] laid out as [k,o]
        "b1":    rnd(ks[1], (C1,)),
        "w2_k":  rnd(ks[2], (3, C1, C2)),        # = conv2.weight[o,c,k] laid out as [k,c,o]
        "b2":    rnd(ks[3], (C2,)),
        "wih_T": rnd(ks[4], (C2, 4 * H_LSTM)),   # = lstm.weight_ih_l0.T (gates i,f,g,o)
        "whh_T": rnd(ks[5], (H_LSTM, 4 * H_LSTM)),
        "b_lstm": rnd(ks[6], (4 * H_LSTM,)),     # = bias_ih_l0 + bias_hh_l0
        "wfc1_T": rnd(ks[7], (H_LSTM, 32)),      # = fc1.weight.T
        "bfc1":  rnd(ks[8], (32,)),
        "wfc2_T": rnd(ks[9], (32, 1)),           # = fc2.weight.T
        "bfc2":  rnd(ks[10], (1,)),
    }
    x = jax.random.normal(ks[11], (B, 1, L), dtype=jnp.float32)

    out = jax.block_until_ready(cnn_lstm_forward(x, params))
    ref = jax.block_until_ready(reference_forward(x, params))
    assert out.shape == (B, 1)
    assert jnp.allclose(out, ref, rtol=1e-3, atol=1e-3), (out, ref)
    print("KERNEL_OK")
</pallas_src>

<mosaic_0001>
module attributes {stable_mosaic.version = 11 : i64} {
  func.func @cnn_lstm_kernel(%arg0: i32, %arg1: memref<1x144x1xf32, #tpu.memory_space<vmem>>, %arg2: memref<3x64xf32, #tpu.memory_space<vmem>>, %arg3: memref<1x64xf32, #tpu.memory_space<vmem>>, %arg4: memref<192x32xf32, #tpu.memory_space<vmem>>, %arg5: memref<1x32xf32, #tpu.memory_space<vmem>>, %arg6: memref<32x256xf32, #tpu.memory_space<vmem>>, %arg7: memref<64x256xf32, #tpu.memory_space<vmem>>, %arg8: memref<1x256xf32, #tpu.memory_space<vmem>>, %arg9: memref<64x32xf32, #tpu.memory_space<vmem>>, %arg10: memref<1x32xf32, #tpu.memory_space<vmem>>, %arg11: memref<32x1xf32, #tpu.memory_space<vmem>>, %arg12: memref<1x1xf32, #tpu.memory_space<vmem>>, %arg13: memref<1x8x1xf32, #tpu.memory_space<vmem>>, %arg14: memref<144x64xf32, #tpu.memory_space<vmem>>, %arg15: memref<128x256xf32, #tpu.memory_space<vmem>>) attributes {dimension_semantics = [#tpu.dimension_semantics<parallel>], iteration_bounds = array<i64: 1>, scalar_prefetch = 0 : i64, scratch_operands = 2 : i64, tpu.core_type = #tpu.core_type<tc>, window_params = [{transform_indices = @transform_0, window_bounds = array<i64: 1, 144, 1>}, {pipeline_mode = #tpu.pipeline_mode<synchronous>, transform_indices = @transform_1, window_bounds = array<i64: 3, 64>}, {pipeline_mode = #tpu.pipeline_mode<synchronous>, transform_indices = @transform_2, window_bounds = array<i64: 1, 64>}, {pipeline_mode = #tpu.pipeline_mode<synchronous>, transform_indices = @transform_3, window_bounds = array<i64: 192, 32>}, {pipeline_mode = #tpu.pipeline_mode<synchronous>, transform_indices = @transform_4, window_bounds = array<i64: 1, 32>}, {pipeline_mode = #tpu.pipeline_mode<synchronous>, transform_indices = @transform_5, window_bounds = array<i64: 32, 256>}, {pipeline_mode = #tpu.pipeline_mode<synchronous>, transform_indices = @transform_6, window_bounds = array<i64: 64, 256>}, {pipeline_mode = #tpu.pipeline_mode<synchronous>, transform_indices = @transform_7, window_bounds = array<i64: 1, 256>}, {pipeline_mode = #tpu.pipeline_mode<synchronous>, transform_indices = @transform_8, window_bounds = array<i64: 64, 32>}, {pipeline_mode = #tpu.pipeline_mode<synchronous>, transform_indices = @transform_9, window_bounds = array<i64: 1, 32>}, {pipeline_mode = #tpu.pipeline_mode<synchronous>, transform_indices = @transform_10, window_bounds = array<i64: 32, 1>}, {pipeline_mode = #tpu.pipeline_mode<synchronous>, transform_indices = @transform_11, window_bounds = array<i64: 1, 1>}, {transform_indices = @transform_12, window_bounds = array<i64: 1, 8, 1>}]} {
    %c0 = arith.constant 0 : index
    %c0_0 = arith.constant 0 : index
    %c0_1 = arith.constant 0 : index
    %0 = vector.load %arg1[%c0, %c0_0, %c0_1] : memref<1x144x1xf32, #tpu.memory_space<vmem>>, vector<1x144x1xf32>
    %1 = vector.shape_cast %0 : vector<1x144x1xf32> to vector<144x1xf32>
    %c0_2 = arith.constant 0 : index
    %c0_3 = arith.constant 0 : index
    %2 = vector.load %arg2[%c0_2, %c0_3] : memref<3x64xf32, #tpu.memory_space<vmem>>, vector<3x64xf32>
    %3 = vector.extract_strided_slice %1 {offsets = [0, 0], sizes = [128, 1], strides = [1, 1]} : vector<144x1xf32> to vector<128x1xf32>
    %4 = vector.extract_strided_slice %2 {offsets = [0, 0], sizes = [1, 64], strides = [1, 1]} : vector<3x64xf32> to vector<1x64xf32>
    %5 = vector.broadcast %3 : vector<128x1xf32> to vector<128x64xf32>
    %6 = vector.broadcast %4 : vector<1x64xf32> to vector<128x64xf32>
    %7 = arith.mulf %5, %6 : vector<128x64xf32>
    %8 = vector.extract_strided_slice %1 {offsets = [8, 0], sizes = [128, 1], strides = [1, 1]} : vector<144x1xf32> to vector<128x1xf32>
    %9 = vector.extract_strided_slice %2 {offsets = [1, 0], sizes = [1, 64], strides = [1, 1]} : vector<3x64xf32> to vector<1x64xf32>
    %10 = vector.broadcast %8 : vector<128x1xf32> to vector<128x64xf32>
    %11 = vector.broadcast %9 : vector<1x64xf32> to vector<128x64xf32>
    %12 = arith.mulf %10, %11 : vector<128x64xf32>
    %13 = arith.addf %7, %12 : vector<128x64xf32>
    %14 = vector.extract_strided_slice %1 {offsets = [16, 0], sizes = [128, 1], strides = [1, 1]} : vector<144x1xf32> to vector<128x1xf32>
    %15 = vector.extract_strided_slice %2 {offsets = [2, 0], sizes = [1, 64], strides = [1, 1]} : vector<3x64xf32> to vector<1x64xf32>
    %16 = vector.broadcast %14 : vector<128x1xf32> to vector<128x64xf32>
    %17 = vector.broadcast %15 : vector<1x64xf32> to vector<128x64xf32>
    %18 = arith.mulf %16, %17 : vector<128x64xf32>
    %19 = arith.addf %13, %18 : vector<128x64xf32>
    %c0_4 = arith.constant 0 : index
    %c0_5 = arith.constant 0 : index
    %20 = vector.load %arg3[%c0_4, %c0_5] : memref<1x64xf32, #tpu.memory_space<vmem>>, vector<1x64xf32>
    %21 = vector.broadcast %20 : vector<1x64xf32> to vector<128x64xf32>
    %22 = arith.addf %19, %21 : vector<128x64xf32>
    %cst = arith.constant 0.000000e+00 : f32
    %23 = vector.broadcast %cst : f32 to vector<128x64xf32>
    %24 = arith.maximumf %22, %23 : vector<128x64xf32>
    %cst_6 = arith.constant 0.000000e+00 : f32
    %25 = vector.broadcast %cst_6 : f32 to vector<8x64xf32>
    %c0_7 = arith.constant 0 : index
    %c0_8 = arith.constant 0 : index
    %26 = vector.load %arg14[%c0_7, %c0_8] : memref<144x64xf32, #tpu.memory_space<vmem>>, vector<8x64xf32>
    tpu.vector_store %arg14[%c0_7, %c0_8], %25 {strides = array<i32>} : memref<144x64xf32, #tpu.memory_space<vmem>>, vector<8x64xf32>,
    %cst_9 = arith.constant 0.000000e+00 : f32
    %27 = vector.broadcast %cst_9 : f32 to vector<8x64xf32>
    %c136 = arith.constant 136 : index
    %c0_10 = arith.constant 0 : index
    %28 = vector.load %arg14[%c136, %c0_10] : memref<144x64xf32, #tpu.memory_space<vmem>>, vector<8x64xf32>
    tpu.vector_store %arg14[%c136, %c0_10], %27 {strides = array<i32>} : memref<144x64xf32, #tpu.memory_space<vmem>>, vector<8x64xf32>,
    %c8 = arith.constant 8 : index
    %c0_11 = arith.constant 0 : index
    %29 = vector.load %arg14[%c8, %c0_11] : memref<144x64xf32, #tpu.memory_space<vmem>>, vector<128x64xf32>
    tpu.vector_store %arg14[%c8, %c0_11], %24 {strides = array<i32>} : memref<144x64xf32, #tpu.memory_space<vmem>>, vector<128x64xf32>,
    %c0_12 = arith.constant 0 : index
    %c0_13 = arith.constant 0 : index
    %30 = vector.load %arg14[%c0_12, %c0_13] : memref<144x64xf32, #tpu.memory_space<vmem>>, vector<128x64xf32>
    %c8_14 = arith.constant 8 : index
    %c0_15 = arith.constant 0 : index
    %31 = vector.load %arg14[%c8_14, %c0_15] : memref<144x64xf32, #tpu.memory_space<vmem>>, vector<128x64xf32>
    %c16 = arith.constant 16 : index
    %c0_16 = arith.constant 0 : index
    %32 = vector.load %arg14[%c16, %c0_16] : memref<144x64xf32, #tpu.memory_space<vmem>>, vector<128x64xf32>
    %33 = tpu.concatenate %30, %31, %32 in 1 : vector<128x64xf32>, vector<128x64xf32>, vector<128x64xf32> -> vector<128x192xf32>
    %c0_17 = arith.constant 0 : index
    %c0_18 = arith.constant 0 : index
    %34 = vector.load %arg4[%c0_17, %c0_18] : memref<192x32xf32, #tpu.memory_space<vmem>>, vector<192x32xf32>
    %cst_19 = arith.constant dense<0.000000e+00> : vector<128x32xf32>
    %35 = tpu.matmul %33, %34, %cst_19 {dimension_numbers = #tpu.dot_dimension_numbers<[1], [0], [0], [1], [0, 0, 1, 1], [], []>} : vector<128x192xf32>, vector<192x32xf32>, vector<128x32xf32> -> vector<128x32xf32>
    %c0_20 = arith.constant 0 : index
    %c0_21 = arith.constant 0 : index
    %36 = vector.load %arg5[%c0_20, %c0_21] : memref<1x32xf32, #tpu.memory_space<vmem>>, vector<1x32xf32>
    %37 = vector.broadcast %36 : vector<1x32xf32> to vector<128x32xf32>
    %38 = arith.addf %35, %37 : vector<128x32xf32>
    %cst_22 = arith.constant 0.000000e+00 : f32
    %39 = vector.broadcast %cst_22 : f32 to vector<128x32xf32>
    %40 = arith.maximumf %38, %39 : vector<128x32xf32>
    %c0_23 = arith.constant 0 : index
    %c0_24 = arith.constant 0 : index
    %41 = vector.load %arg6[%c0_23, %c0_24] : memref<32x256xf32, #tpu.memory_space<vmem>>, vector<32x256xf32>
    %cst_25 = arith.constant dense<0.000000e+00> : vector<128x256xf32>
    %42 = tpu.matmul %40, %41, %cst_25 {dimension_numbers = #tpu.dot_dimension_numbers<[1], [0], [0], [1], [0, 0, 1, 1], [], []>} : vector<128x32xf32>, vector<32x256xf32>, vector<128x256xf32> -> vector<128x256xf32>
    %c0_26 = arith.constant 0 : index
    %c0_27 = arith.constant 0 : index
    %43 = vector.load %arg8[%c0_26, %c0_27] : memref<1x256xf32, #tpu.memory_space<vmem>>, vector<1x256xf32>
    %44 = vector.broadcast %43 : vector<1x256xf32> to vector<128x256xf32>
    %45 = arith.addf %42, %44 : vector<128x256xf32>
    %c0_28 = arith.constant 0 : index
    %c0_29 = arith.constant 0 : index
    %46 = vector.load %arg15[%c0_28, %c0_29] : memref<128x256xf32, #tpu.memory_space<vmem>>, vector<128x256xf32>
    tpu.vector_store %arg15[%c0_28, %c0_29], %45 {strides = array<i32>} : memref<128x256xf32, #tpu.memory_space<vmem>>, vector<128x256xf32>,
    %c0_30 = arith.constant 0 : index
    %c0_31 = arith.constant 0 : index
    %47 = vector.load %arg7[%c0_30, %c0_31] : memref<64x256xf32, #tpu.memory_space<vmem>>, vector<64x256xf32>
    %cst_32 = arith.constant 0.000000e+00 : f32
    %48 = vector.broadcast %cst_32 : f32 to vector<8x64xf32>
    %cst_33 = arith.constant 0.000000e+00 : f32
    %49 = vector.broadcast %cst_33 : f32 to vector<8x64xf32>
    %c0_34 = arith.constant 0 : index
    %c0_35 = arith.constant 0 : index
    %50 = vector.load %arg15[%c0_34, %c0_35] : memref<128x256xf32, #tpu.memory_space<vmem>>, vector<8x256xf32>
    %cst_36 = arith.constant dense<0.000000e+00> : vector<8x256xf32>
    %51 = tpu.matmul %48, %47, %cst_36 {dimension_numbers = #tpu.dot_dimension_numbers<[1], [0], [0], [1], [0, 0, 1, 1], [], []>} : vector<8x64xf32>, vector<64x256xf32>, vector<8x256xf32> -> vector<8x256xf32>
    %52 = arith.addf %50, %51 : vector<8x256xf32>
    %53 = vector.extract_strided_slice %52 {offsets = [0, 0], sizes = [8, 192], strides = [1, 1]} : vector<8x256xf32> to vector<8x192xf32>
    %54 = arith.negf %53 : vector<8x192xf32>
    %55 = math.exp %54 : vector<8x192xf32>
    %cst_37 = arith.constant 1.000000e+00 : f32
    %56 = vector.broadcast %cst_37 : f32 to vector<8x192xf32>
    %57 = arith.addf %56, %55 : vector<8x192xf32>
    %58 = arith.divf %56, %57 : vector<8x192xf32>
    %59 = vector.extract_strided_slice %52 {offsets = [0, 192], sizes = [8, 64], strides = [1, 1]} : vector<8x256xf32> to vector<8x64xf32>
    %60 = math.tanh %59 : vector<8x64xf32>
    %61 = vector.extract_strided_slice %58 {offsets = [0, 64], sizes = [8, 64], strides = [1, 1]} : vector<8x192xf32> to vector<8x64xf32>
    %62 = arith.mulf %61, %49 : vector<8x64xf32>
    %63 = vector.extract_strided_slice %58 {offsets = [0, 0], sizes = [8, 64], strides = [1, 1]} : vector<8x192xf32> to vector<8x64xf32>
    %64 = arith.mulf %63, %60 : vector<8x64xf32>
    %65 = arith.addf %62, %64 : vector<8x64xf32>
    %66 = vector.extract_strided_slice %58 {offsets = [0, 128], sizes = [8, 64], strides = [1, 1]} : vector<8x192xf32> to vector<8x64xf32>
    %67 = math.tanh %65 : vector<8x64xf32>
    %68 = arith.mulf %66, %67 : vector<8x64xf32>
    %c8_38 = arith.constant 8 : index
    %c0_39 = arith.constant 0 : index
    %69 = vector.load %arg15[%c8_38, %c0_39] : memref<128x256xf32, #tpu.memory_space<vmem>>, vector<8x256xf32>
    %cst_40 = arith.constant dense<0.000000e+00> : vector<8x256xf32>
    %70 = tpu.matmul %68, %47, %cst_40 {dimension_numbers = #tpu.dot_dimension_numbers<[1], [0], [0], [1], [0, 0, 1, 1], [], []>} : vector<8x64xf32>, vector<64x256xf32>, vector<8x256xf32> -> vector<8x256xf32>
    %71 = arith.addf %69, %70 : vector<8x256xf32>
    %72 = vector.extract_strided_slice %71 {offsets = [0, 0], sizes = [8, 192], strides = [1, 1]} : vector<8x256xf32> to vector<8x192xf32>
    %73 = arith.negf %72 : vector<8x192xf32>
    %74 = math.exp %73 : vector<8x192xf32>
    %cst_41 = arith.constant 1.000000e+00 : f32
    %75 = vector.broadcast %cst_41 : f32 to vector<8x192xf32>
    %76 = arith.addf %75, %74 : vector<8x192xf32>
    %77 = arith.divf %75, %76 : vector<8x192xf32>
    %78 = vector.extract_strided_slice %71 {offsets = [0, 192], sizes = [8, 64], strides = [1, 1]} : vector<8x256xf32> to vector<8x64xf32>
    %79 = math.tanh %78 : vector<8x64xf32>
    %80 = vector.extract_strided_slice %77 {offsets = [0, 64], sizes = [8, 64], strides = [1, 1]} : vector<8x192xf32> to vector<8x64xf32>
    %81 = arith.mulf %80, %65 : vector<8x64xf32>
    %82 = vector.extract_strided_slice %77 {offsets = [0, 0], sizes = [8, 64], strides = [1, 1]} : vector<8x192xf32> to vector<8x64xf32>
    %83 = arith.mulf %82, %79 : vector<8x64xf32>
    %84 = arith.addf %81, %83 : vector<8x64xf32>
    %85 = vector.extract_strided_slice %77 {offsets = [0, 128], sizes = [8, 64], strides = [1, 1]} : vector<8x192xf32> to vector<8x64xf32>
    %86 = math.tanh %84 : vector<8x64xf32>
    %87 = arith.mulf %85, %86 : vector<8x64xf32>
    %c16_42 = arith.constant 16 : index
    %c0_43 = arith.constant 0 : index
    %88 = vector.load %arg15[%c16_42, %c0_43] : memref<128x256xf32, #tpu.memory_space<vmem>>, vector<8x256xf32>
    %cst_44 = arith.constant dense<0.000000e+00> : vector<8x256xf32>
    %89 = tpu.matmul %87, %47, %cst_44 {dimension_numbers = #tpu.dot_dimension_numbers<[1], [0], [0], [1], [0, 0, 1, 1], [], []>} : vector<8x64xf32>, vector<64x256xf32>, vector<8x256xf32> -> vector<8x256xf32>
    %90 = arith.addf %88, %89 : vector<8x256xf32>
    %91 = vector.extract_strided_slice %90 {offsets = [0, 0], sizes = [8, 192], strides = [1, 1]} : vector<8x256xf32> to vector<8x192xf32>
    %92 = arith.negf %91 : vector<8x192xf32>
    %93 = math.exp %92 : vector<8x192xf32>
    %cst_45 = arith.constant 1.000000e+00 : f32
    %94 = vector.broadcast %cst_45 : f32 to vector<8x192xf32>
    %95 = arith.addf %94, %93 : vector<8x192xf32>
    %96 = arith.divf %94, %95 : vector<8x192xf32>
    %97 = vector.extract_strided_slice %90 {offsets = [0, 192], sizes = [8, 64], strides = [1, 1]} : vector<8x256xf32> to vector<8x64xf32>
    %98 = math.tanh %97 : vector<8x64xf32>
    %99 = vector.extract_strided_slice %96 {offsets = [0, 64], sizes = [8, 64], strides = [1, 1]} : vector<8x192xf32> to vector<8x64xf32>
    %100 = arith.mulf %99, %84 : vector<8x64xf32>
    %101 = vector.extract_strided_slice %96 {offsets = [0, 0], sizes = [8, 64], strides = [1, 1]} : vector<8x192xf32> to vector<8x64xf32>
    %102 = arith.mulf %101, %98 : vector<8x64xf32>
    %103 = arith.addf %100, %102 : vector<8x64xf32>
    %104 = vector.extract_strided_slice %96 {offsets = [0, 128], sizes = [8, 64], strides = [1, 1]} : vector<8x192xf32> to vector<8x64xf32>
    %105 = math.tanh %103 : vector<8x64xf32>
    %106 = arith.mulf %104, %105 : vector<8x64xf32>
    %c24 = arith.constant 24 : index
    %c0_46 = arith.constant 0 : index
    %107 = vector.load %arg15[%c24, %c0_46] : memref<128x256xf32, #tpu.memory_space<vmem>>, vector<8x256xf32>
    %cst_47 = arith.constant dense<0.000000e+00> : vector<8x256xf32>
    %108 = tpu.matmul %106, %47, %cst_47 {dimension_numbers = #tpu.dot_dimension_numbers<[1], [0], [0], [1], [0, 0, 1, 1], [], []>} : vector<8x64xf32>, vector<64x256xf32>, vector<8x256xf32> -> vector<8x256xf32>
    %109 = arith.addf %107, %108 : vector<8x256xf32>
    %110 = vector.extract_strided_slice %109 {offsets = [0, 0], sizes = [8, 192], strides = [1, 1]} : vector<8x256xf32> to vector<8x192xf32>
    %111 = arith.negf %110 : vector<8x192xf32>
    %112 = math.exp %111 : vector<8x192xf32>
    %cst_48 = arith.constant 1.000000e+00 : f32
    %113 = vector.broadcast %cst_48 : f32 to vector<8x192xf32>
    %114 = arith.addf %113, %112 : vector<8x192xf32>
    %115 = arith.divf %113, %114 : vector<8x192xf32>
    %116 = vector.extract_strided_slice %109 {offsets = [0, 192], sizes = [8, 64], strides = [1, 1]} : vector<8x256xf32> to vector<8x64xf32>
    %117 = math.tanh %116 : vector<8x64xf32>
    %118 = vector.extract_strided_slice %115 {offsets = [0, 64], sizes = [8, 64], strides = [1, 1]} : vector<8x192xf32> to vector<8x64xf32>
    %119 = arith.mulf %118, %103 : vector<8x64xf32>
    %120 = vector.extract_strided_slice %115 {offsets = [0, 0], sizes = [8, 64], strides = [1, 1]} : vector<8x192xf32> to vector<8x64xf32>
    %121 = arith.mulf %120, %117 : vector<8x64xf32>
    %122 = arith.addf %119, %121 : vector<8x64xf32>
    %123 = vector.extract_strided_slice %115 {offsets = [0, 128], sizes = [8, 64], strides = [1, 1]} : vector<8x192xf32> to vector<8x64xf32>
    %124 = math.tanh %122 : vector<8x64xf32>
    %125 = arith.mulf %123, %124 : vector<8x64xf32>
    %c32 = arith.constant 32 : index
    %c0_49 = arith.constant 0 : index
    %126 = vector.load %arg15[%c32, %c0_49] : memref<128x256xf32, #tpu.memory_space<vmem>>, vector<8x256xf32>
    %cst_50 = arith.constant dense<0.000000e+00> : vector<8x256xf32>
    %127 = tpu.matmul %125, %47, %cst_50 {dimension_numbers = #tpu.dot_dimension_numbers<[1], [0], [0], [1], [0, 0, 1, 1], [], []>} : vector<8x64xf32>, vector<64x256xf32>, vector<8x256xf32> -> vector<8x256xf32>
    %128 = arith.addf %126, %127 : vector<8x256xf32>
    %129 = vector.extract_strided_slice %128 {offsets = [0, 0], sizes = [8, 192], strides = [1, 1]} : vector<8x256xf32> to vector<8x192xf32>
    %130 = arith.negf %129 : vector<8x192xf32>
    %131 = math.exp %130 : vector<8x192xf32>
    %cst_51 = arith.constant 1.000000e+00 : f32
    %132 = vector.broadcast %cst_51 : f32 to vector<8x192xf32>
    %133 = arith.addf %132, %131 : vector<8x192xf32>
    %134 = arith.divf %132, %133 : vector<8x192xf32>
    %135 = vector.extract_strided_slice %128 {offsets = [0, 192], sizes = [8, 64], strides = [1, 1]} : vector<8x256xf32> to vector<8x64xf32>
    %136 = math.tanh %135 : vector<8x64xf32>
    %137 = vector.extract_strided_slice %134 {offsets = [0, 64], sizes = [8, 64], strides = [1, 1]} : vector<8x192xf32> to vector<8x64xf32>
    %138 = arith.mulf %137, %122 : vector<8x64xf32>
    %139 = vector.extract_strided_slice %134 {offsets = [0, 0], sizes = [8, 64], strides = [1, 1]} : vector<8x192xf32> to vector<8x64xf32>
    %140 = arith.mulf %139, %136 : vector<8x64xf32>
    %141 = arith.addf %138, %140 : vector<8x64xf32>
    %142 = vector.extract_strided_slice %134 {offsets = [0, 128], sizes = [8, 64], strides = [1, 1]} : vector<8x192xf32> to vector<8x64xf32>
    %143 = math.tanh %141 : vector<8x64xf32>
    %144 = arith.mulf %142, %143 : vector<8x64xf32>
    %c40 = arith.constant 40 : index
    %c0_52 = arith.constant 0 : index
    %145 = vector.load %arg15[%c40, %c0_52] : memref<128x256xf32, #tpu.memory_space<vmem>>, vector<8x256xf32>
    %cst_53 = arith.constant dense<0.000000e+00> : vector<8x256xf32>
    %146 = tpu.matmul %144, %47, %cst_53 {dimension_numbers = #tpu.dot_dimension_numbers<[1], [0], [0], [1], [0, 0, 1, 1], [], []>} : vector<8x64xf32>, vector<64x256xf32>, vector<8x256xf32> -> vector<8x256xf32>
    %147 = arith.addf %145, %146 : vector<8x256xf32>
    %148 = vector.extract_strided_slice %147 {offsets = [0, 0], sizes = [8, 192], strides = [1, 1]} : vector<8x256xf32> to vector<8x192xf32>
    %149 = arith.negf %148 : vector<8x192xf32>
    %150 = math.exp %149 : vector<8x192xf32>
    %cst_54 = arith.constant 1.000000e+00 : f32
    %151 = vector.broadcast %cst_54 : f32 to vector<8x192xf32>
    %152 = arith.addf %151, %150 : vector<8x192xf32>
    %153 = arith.divf %151, %152 : vector<8x192xf32>
    %154 = vector.extract_strided_slice %147 {offsets = [0, 192], sizes = [8, 64], strides = [1, 1]} : vector<8x256xf32> to vector<8x64xf32>
    %155 = math.tanh %154 : vector<8x64xf32>
    %156 = vector.extract_strided_slice %153 {offsets = [0, 64], sizes = [8, 64], strides = [1, 1]} : vector<8x192xf32> to vector<8x64xf32>
    %157 = arith.mulf %156, %141 : vector<8x64xf32>
    %158 = vector.extract_strided_slice %153 {offsets = [0, 0], sizes = [8, 64], strides = [1, 1]} : vector<8x192xf32> to vector<8x64xf32>
    %159 = arith.mulf %158, %155 : vector<8x64xf32>
    %160 = arith.addf %157, %159 : vector<8x64xf32>
    %161 = vector.extract_strided_slice %153 {offsets = [0, 128], sizes = [8, 64], strides = [1, 1]} : vector<8x192xf32> to vector<8x64xf32>
    %162 = math.tanh %160 : vector<8x64xf32>
    %163 = arith.mulf %161, %162 : vector<8x64xf32>
    %c48 = arith.constant 48 : index
    %c0_55 = arith.constant 0 : index
    %164 = vector.load %arg15[%c48, %c0_55] : memref<128x256xf32, #tpu.memory_space<vmem>>, vector<8x256xf32>
    %cst_56 = arith.constant dense<0.000000e+00> : vector<8x256xf32>
    %165 = tpu.matmul %163, %47, %cst_56 {dimension_numbers = #tpu.dot_dimension_numbers<[1], [0], [0], [1], [0, 0, 1, 1], [], []>} : vector<8x64xf32>, vector<64x256xf32>, vector<8x256xf32> -> vector<8x256xf32>
    %166 = arith.addf %164, %165 : vector<8x256xf32>
    %167 = vector.extract_strided_slice %166 {offsets = [0, 0], sizes = [8, 192], strides = [1, 1]} : vector<8x256xf32> to vector<8x192xf32>
    %168 = arith.negf %167 : vector<8x192xf32>
    %169 = math.exp %168 : vector<8x192xf32>
    %cst_57 = arith.constant 1.000000e+00 : f32
    %170 = vector.broadcast %cst_57 : f32 to vector<8x192xf32>
    %171 = arith.addf %170, %169 : vector<8x192xf32>
    %172 = arith.divf %170, %171 : vector<8x192xf32>
    %173 = vector.extract_strided_slice %166 {offsets = [0, 192], sizes = [8, 64], strides = [1, 1]} : vector<8x256xf32> to vector<8x64xf32>
    %174 = math.tanh %173 : vector<8x64xf32>
    %175 = vector.extract_strided_slice %172 {offsets = [0, 64], sizes = [8, 64], strides = [1, 1]} : vector<8x192xf32> to vector<8x64xf32>
    %176 = arith.mulf %175, %160 : vector<8x64xf32>
    %177 = vector.extract_strided_slice %172 {offsets = [0, 0], sizes = [8, 64], strides = [1, 1]} : vector<8x192xf32> to vector<8x64xf32>
    %178 = arith.mulf %177, %174 : vector<8x64xf32>
    %179 = arith.addf %176, %178 : vector<8x64xf32>
    %180 = vector.extract_strided_slice %172 {offsets = [0, 128], sizes = [8, 64], strides = [1, 1]} : vector<8x192xf32> to vector<8x64xf32>
    %181 = math.tanh %179 : vector<8x64xf32>
    %182 = arith.mulf %180, %181 : vector<8x64xf32>
    %c56 = arith.constant 56 : index
    %c0_58 = arith.constant 0 : index
    %183 = vector.load %arg15[%c56, %c0_58] : memref<128x256xf32, #tpu.memory_space<vmem>>, vector<8x256xf32>
    %cst_59 = arith.constant dense<0.000000e+00> : vector<8x256xf32>
    %184 = tpu.matmul %182, %47, %cst_59 {dimension_numbers = #tpu.dot_dimension_numbers<[1], [0], [0], [1], [0, 0, 1, 1], [], []>} : vector<8x64xf32>, vector<64x256xf32>, vector<8x256xf32> -> vector<8x256xf32>
    %185 = arith.addf %183, %184 : vector<8x256xf32>
    %186 = vector.extract_strided_slice %185 {offsets = [0, 0], sizes = [8, 192], strides = [1, 1]} : vector<8x256xf32> to vector<8x192xf32>
    %187 = arith.negf %186 : vector<8x192xf32>
    %188 = math.exp %187 : vector<8x192xf32>
    %cst_60 = arith.constant 1.000000e+00 : f32
    %189 = vector.broadcast %cst_60 : f32 to vector<8x192xf32>
    %190 = arith.addf %189, %188 : vector<8x192xf32>
    %191 = arith.divf %189, %190 : vector<8x192xf32>
    %192 = vector.extract_strided_slice %185 {offsets = [0, 192], sizes = [8, 64], strides = [1, 1]} : vector<8x256xf32> to vector<8x64xf32>
    %193 = math.tanh %192 : vector<8x64xf32>
    %194 = vector.extract_strided_slice %191 {offsets = [0, 64], sizes = [8, 64], strides = [1, 1]} : vector<8x192xf32> to vector<8x64xf32>
    %195 = arith.mulf %194, %179 : vector<8x64xf32>
    %196 = vector.extract_strided_slice %191 {offsets = [0, 0], sizes = [8, 64], strides = [1, 1]} : vector<8x192xf32> to vector<8x64xf32>
    %197 = arith.mulf %196, %193 : vector<8x64xf32>
    %198 = arith.addf %195, %197 : vector<8x64xf32>
    %199 = vector.extract_strided_slice %191 {offsets = [0, 128], sizes = [8, 64], strides = [1, 1]} : vector<8x192xf32> to vector<8x64xf32>
    %200 = math.tanh %198 : vector<8x64xf32>
    %201 = arith.mulf %199, %200 : vector<8x64xf32>
    %c64 = arith.constant 64 : index
    %c0_61 = arith.constant 0 : index
    %202 = vector.load %arg15[%c64, %c0_61] : memref<128x256xf32, #tpu.memory_space<vmem>>, vector<8x256xf32>
    %cst_62 = arith.constant dense<0.000000e+00> : vector<8x256xf32>
    %203 = tpu.matmul %201, %47, %cst_62 {dimension_numbers = #tpu.dot_dimension_numbers<[1], [0], [0], [1], [0, 0, 1, 1], [], []>} : vector<8x64xf32>, vector<64x256xf32>, vector<8x256xf32> -> vector<8x256xf32>
    %204 = arith.addf %202, %203 : vector<8x256xf32>
    %205 = vector.extract_strided_slice %204 {offsets = [0, 0], sizes = [8, 192], strides = [1, 1]} : vector<8x256xf32> to vector<8x192xf32>
    %206 = arith.negf %205 : vector<8x192xf32>
    %207 = math.exp %206 : vector<8x192xf32>
    %cst_63 = arith.constant 1.000000e+00 : f32
    %208 = vector.broadcast %cst_63 : f32 to vector<8x192xf32>
    %209 = arith.addf %208, %207 : vector<8x192xf32>
    %210 = arith.divf %208, %209 : vector<8x192xf32>
    %211 = vector.extract_strided_slice %204 {offsets = [0, 192], sizes = [8, 64], strides = [1, 1]} : vector<8x256xf32> to vector<8x64xf32>
    %212 = math.tanh %211 : vector<8x64xf32>
    %213 = vector.extract_strided_slice %210 {offsets = [0, 64], sizes = [8, 64], strides = [1, 1]} : vector<8x192xf32> to vector<8x64xf32>
    %214 = arith.mulf %213, %198 : vector<8x64xf32>
    %215 = vector.extract_strided_slice %210 {offsets = [0, 0], sizes = [8, 64], strides = [1, 1]} : vector<8x192xf32> to vector<8x64xf32>
    %216 = arith.mulf %215, %212 : vector<8x64xf32>
    %217 = arith.addf %214, %216 : vector<8x64xf32>
    %218 = vector.extract_strided_slice %210 {offsets = [0, 128], sizes = [8, 64], strides = [1, 1]} : vector<8x192xf32> to vector<8x64xf32>
    %219 = math.tanh %217 : vector<8x64xf32>
    %220 = arith.mulf %218, %219 : vector<8x64xf32>
    %c72 = arith.constant 72 : index
    %c0_64 = arith.constant 0 : index
    %221 = vector.load %arg15[%c72, %c0_64] : memref<128x256xf32, #tpu.memory_space<vmem>>, vector<8x256xf32>
    %cst_65 = arith.constant dense<0.000000e+00> : vector<8x256xf32>
    %222 = tpu.matmul %220, %47, %cst_65 {dimension_numbers = #tpu.dot_dimension_numbers<[1], [0], [0], [1], [0, 0, 1, 1], [], []>} : vector<8x64xf32>, vector<64x256xf32>, vector<8x256xf32> -> vector<8x256xf32>
    %223 = arith.addf %221, %222 : vector<8x256xf32>
    %224 = vector.extract_strided_slice %223 {offsets = [0, 0], sizes = [8, 192], strides = [1, 1]} : vector<8x256xf32> to vector<8x192xf32>
    %225 = arith.negf %224 : vector<8x192xf32>
    %226 = math.exp %225 : vector<8x192xf32>
    %cst_66 = arith.constant 1.000000e+00 : f32
    %227 = vector.broadcast %cst_66 : f32 to vector<8x192xf32>
    %228 = arith.addf %227, %226 : vector<8x192xf32>
    %229 = arith.divf %227, %228 : vector<8x192xf32>
    %230 = vector.extract_strided_slice %223 {offsets = [0, 192], sizes = [8, 64], strides = [1, 1]} : vector<8x256xf32> to vector<8x64xf32>
    %231 = math.tanh %230 : vector<8x64xf32>
    %232 = vector.extract_strided_slice %229 {offsets = [0, 64], sizes = [8, 64], strides = [1, 1]} : vector<8x192xf32> to vector<8x64xf32>
    %233 = arith.mulf %232, %217 : vector<8x64xf32>
    %234 = vector.extract_strided_slice %229 {offsets = [0, 0], sizes = [8, 64], strides = [1, 1]} : vector<8x192xf32> to vector<8x64xf32>
    %235 = arith.mulf %234, %231 : vector<8x64xf32>
    %236 = arith.addf %233, %235 : vector<8x64xf32>
    %237 = vector.extract_strided_slice %229 {offsets = [0, 128], sizes = [8, 64], strides = [1, 1]} : vector<8x192xf32> to vector<8x64xf32>
    %238 = math.tanh %236 : vector<8x64xf32>
    %239 = arith.mulf %237, %238 : vector<8x64xf32>
    %c80 = arith.constant 80 : index
    %c0_67 = arith.constant 0 : index
    %240 = vector.load %arg15[%c80, %c0_67] : memref<128x256xf32, #tpu.memory_space<vmem>>, vector<8x256xf32>
    %cst_68 = arith.constant dense<0.000000e+00> : vector<8x256xf32>
    %241 = tpu.matmul %239, %47, %cst_68 {dimension_numbers = #tpu.dot_dimension_numbers<[1], [0], [0], [1], [0, 0, 1, 1], [], []>} : vector<8x64xf32>, vector<64x256xf32>, vector<8x256xf32> -> vector<8x256xf32>
    %242 = arith.addf %240, %241 : vector<8x256xf32>
    %243 = vector.extract_strided_slice %242 {offsets = [0, 0], sizes = [8, 192], strides = [1, 1]} : vector<8x256xf32> to vector<8x192xf32>
    %244 = arith.negf %243 : vector<8x192xf32>
    %245 = math.exp %244 : vector<8x192xf32>
    %cst_69 = arith.constant 1.000000e+00 : f32
    %246 = vector.broadcast %cst_69 : f32 to vector<8x192xf32>
    %247 = arith.addf %246, %245 : vector<8x192xf32>
    %248 = arith.divf %246, %247 : vector<8x192xf32>
    %249 = vector.extract_strided_slice %242 {offsets = [0, 192], sizes = [8, 64], strides = [1, 1]} : vector<8x256xf32> to vector<8x64xf32>
    %250 = math.tanh %249 : vector<8x64xf32>
    %251 = vector.extract_strided_slice %248 {offsets = [0, 64], sizes = [8, 64], strides = [1, 1]} : vector<8x192xf32> to vector<8x64xf32>
    %252 = arith.mulf %251, %236 : vector<8x64xf32>
    %253 = vector.extract_strided_slice %248 {offsets = [0, 0], sizes = [8, 64], strides = [1, 1]} : vector<8x192xf32> to vector<8x64xf32>
    %254 = arith.mulf %253, %250 : vector<8x64xf32>
    %255 = arith.addf %252, %254 : vector<8x64xf32>
    %256 = vector.extract_strided_slice %248 {offsets = [0, 128], sizes = [8, 64], strides = [1, 1]} : vector<8x192xf32> to vector<8x64xf32>
    %257 = math.tanh %255 : vector<8x64xf32>
    %258 = arith.mulf %256, %257 : vector<8x64xf32>
    %c88 = arith.constant 88 : index
    %c0_70 = arith.constant 0 : index
    %259 = vector.load %arg15[%c88, %c0_70] : memref<128x256xf32, #tpu.memory_space<vmem>>, vector<8x256xf32>
    %cst_71 = arith.constant dense<0.000000e+00> : vector<8x256xf32>
    %260 = tpu.matmul %258, %47, %cst_71 {dimension_numbers = #tpu.dot_dimension_numbers<[1], [0], [0], [1], [0, 0, 1, 1], [], []>} : vector<8x64xf32>, vector<64x256xf32>, vector<8x256xf32> -> vector<8x256xf32>
    %261 = arith.addf %259, %260 : vector<8x256xf32>
    %262 = vector.extract_strided_slice %261 {offsets = [0, 0], sizes = [8, 192], strides = [1, 1]} : vector<8x256xf32> to vector<8x192xf32>
    %263 = arith.negf %262 : vector<8x192xf32>
    %264 = math.exp %263 : vector<8x192xf32>
    %cst_72 = arith.constant 1.000000e+00 : f32
    %265 = vector.broadcast %cst_72 : f32 to vector<8x192xf32>
    %266 = arith.addf %265, %264 : vector<8x192xf32>
    %267 = arith.divf %265, %266 : vector<8x192xf32>
    %268 = vector.extract_strided_slice %261 {offsets = [0, 192], sizes = [8, 64], strides = [1, 1]} : vector<8x256xf32> to vector<8x64xf32>
    %269 = math.tanh %268 : vector<8x64xf32>
    %270 = vector.extract_strided_slice %267 {offsets = [0, 64], sizes = [8, 64], strides = [1, 1]} : vector<8x192xf32> to vector<8x64xf32>
    %271 = arith.mulf %270, %255 : vector<8x64xf32>
    %272 = vector.extract_strided_slice %267 {offsets = [0, 0], sizes = [8, 64], strides = [1, 1]} : vector<8x192xf32> to vector<8x64xf32>
    %273 = arith.mulf %272, %269 : vector<8x64xf32>
    %274 = arith.addf %271, %273 : vector<8x64xf32>
    %275 = vector.extract_strided_slice %267 {offsets = [0, 128], sizes = [8, 64], strides = [1, 1]} : vector<8x192xf32> to vector<8x64xf32>
    %276 = math.tanh %274 : vector<8x64xf32>
    %277 = arith.mulf %275, %276 : vector<8x64xf32>
    %c96 = arith.constant 96 : index
    %c0_73 = arith.constant 0 : index
    %278 = vector.load %arg15[%c96, %c0_73] : memref<128x256xf32, #tpu.memory_space<vmem>>, vector<8x256xf32>
    %cst_74 = arith.constant dense<0.000000e+00> : vector<8x256xf32>
    %279 = tpu.matmul %277, %47, %cst_74 {dimension_numbers = #tpu.dot_dimension_numbers<[1], [0], [0], [1], [0, 0, 1, 1], [], []>} : vector<8x64xf32>, vector<64x256xf32>, vector<8x256xf32> -> vector<8x256xf32>
    %280 = arith.addf %278, %279 : vector<8x256xf32>
    %281 = vector.extract_strided_slice %280 {offsets = [0, 0], sizes = [8, 192], strides = [1, 1]} : vector<8x256xf32> to vector<8x192xf32>
    %282 = arith.negf %281 : vector<8x192xf32>
    %283 = math.exp %282 : vector<8x192xf32>
    %cst_75 = arith.constant 1.000000e+00 : f32
    %284 = vector.broadcast %cst_75 : f32 to vector<8x192xf32>
    %285 = arith.addf %284, %283 : vector<8x192xf32>
    %286 = arith.divf %284, %285 : vector<8x192xf32>
    %287 = vector.extract_strided_slice %280 {offsets = [0, 192], sizes = [8, 64], strides = [1, 1]} : vector<8x256xf32> to vector<8x64xf32>
    %288 = math.tanh %287 : vector<8x64xf32>
    %289 = vector.extract_strided_slice %286 {offsets = [0, 64], sizes = [8, 64], strides = [1, 1]} : vector<8x192xf32> to vector<8x64xf32>
    %290 = arith.mulf %289, %274 : vector<8x64xf32>
    %291 = vector.extract_strided_slice %286 {offsets = [0, 0], sizes = [8, 64], strides = [1, 1]} : vector<8x192xf32> to vector<8x64xf32>
    %292 = arith.mulf %291, %288 : vector<8x64xf32>
    %293 = arith.addf %290, %292 : vector<8x64xf32>
    %294 = vector.extract_strided_slice %286 {offsets = [0, 128], sizes = [8, 64], strides = [1, 1]} : vector<8x192xf32> to vector<8x64xf32>
    %295 = math.tanh %293 : vector<8x64xf32>
    %296 = arith.mulf %294, %295 : vector<8x64xf32>
    %c104 = arith.constant 104 : index
    %c0_76 = arith.constant 0 : index
    %297 = vector.load %arg15[%c104, %c0_76] : memref<128x256xf32, #tpu.memory_space<vmem>>, vector<8x256xf32>
    %cst_77 = arith.constant dense<0.000000e+00> : vector<8x256xf32>
    %298 = tpu.matmul %296, %47, %cst_77 {dimension_numbers = #tpu.dot_dimension_numbers<[1], [0], [0], [1], [0, 0, 1, 1], [], []>} : vector<8x64xf32>, vector<64x256xf32>, vector<8x256xf32> -> vector<8x256xf32>
    %299 = arith.addf %297, %298 : vector<8x256xf32>
    %300 = vector.extract_strided_slice %299 {offsets = [0, 0], sizes = [8, 192], strides = [1, 1]} : vector<8x256xf32> to vector<8x192xf32>
    %301 = arith.negf %300 : vector<8x192xf32>
    %302 = math.exp %301 : vector<8x192xf32>
    %cst_78 = arith.constant 1.000000e+00 : f32
    %303 = vector.broadcast %cst_78 : f32 to vector<8x192xf32>
    %304 = arith.addf %303, %302 : vector<8x192xf32>
    %305 = arith.divf %303, %304 : vector<8x192xf32>
    %306 = vector.extract_strided_slice %299 {offsets = [0, 192], sizes = [8, 64], strides = [1, 1]} : vector<8x256xf32> to vector<8x64xf32>
    %307 = math.tanh %306 : vector<8x64xf32>
    %308 = vector.extract_strided_slice %305 {offsets = [0, 64], sizes = [8, 64], strides = [1, 1]} : vector<8x192xf32> to vector<8x64xf32>
    %309 = arith.mulf %308, %293 : vector<8x64xf32>
    %310 = vector.extract_strided_slice %305 {offsets = [0, 0], sizes = [8, 64], strides = [1, 1]} : vector<8x192xf32> to vector<8x64xf32>
    %311 = arith.mulf %310, %307 : vector<8x64xf32>
    %312 = arith.addf %309, %311 : vector<8x64xf32>
    %313 = vector.extract_strided_slice %305 {offsets = [0, 128], sizes = [8, 64], strides = [1, 1]} : vector<8x192xf32> to vector<8x64xf32>
    %314 = math.tanh %312 : vector<8x64xf32>
    %315 = arith.mulf %313, %314 : vector<8x64xf32>
    %c112 = arith.constant 112 : index
    %c0_79 = arith.constant 0 : index
    %316 = vector.load %arg15[%c112, %c0_79] : memref<128x256xf32, #tpu.memory_space<vmem>>, vector<8x256xf32>
    %cst_80 = arith.constant dense<0.000000e+00> : vector<8x256xf32>
    %317 = tpu.matmul %315, %47, %cst_80 {dimension_numbers = #tpu.dot_dimension_numbers<[1], [0], [0], [1], [0, 0, 1, 1], [], []>} : vector<8x64xf32>, vector<64x256xf32>, vector<8x256xf32> -> vector<8x256xf32>
    %318 = arith.addf %316, %317 : vector<8x256xf32>
    %319 = vector.extract_strided_slice %318 {offsets = [0, 0], sizes = [8, 192], strides = [1, 1]} : vector<8x256xf32> to vector<8x192xf32>
    %320 = arith.negf %319 : vector<8x192xf32>
    %321 = math.exp %320 : vector<8x192xf32>
    %cst_81 = arith.constant 1.000000e+00 : f32
    %322 = vector.broadcast %cst_81 : f32 to vector<8x192xf32>
    %323 = arith.addf %322, %321 : vector<8x192xf32>
    %324 = arith.divf %322, %323 : vector<8x192xf32>
    %325 = vector.extract_strided_slice %318 {offsets = [0, 192], sizes = [8, 64], strides = [1, 1]} : vector<8x256xf32> to vector<8x64xf32>
    %326 = math.tanh %325 : vector<8x64xf32>
    %327 = vector.extract_strided_slice %324 {offsets = [0, 64], sizes = [8, 64], strides = [1, 1]} : vector<8x192xf32> to vector<8x64xf32>
    %328 = arith.mulf %327, %312 : vector<8x64xf32>
    %329 = vector.extract_strided_slice %324 {offsets = [0, 0], sizes = [8, 64], strides = [1, 1]} : vector<8x192xf32> to vector<8x64xf32>
    %330 = arith.mulf %329, %326 : vector<8x64xf32>
    %331 = arith.addf %328, %330 : vector<8x64xf32>
    %332 = vector.extract_strided_slice %324 {offsets = [0, 128], sizes = [8, 64], strides = [1, 1]} : vector<8x192xf32> to vector<8x64xf32>
    %333 = math.tanh %331 : vector<8x64xf32>
    %334 = arith.mulf %332, %333 : vector<8x64xf32>
    %c120 = arith.constant 120 : index
    %c0_82 = arith.constant 0 : index
    %335 = vector.load %arg15[%c120, %c0_82] : memref<128x256xf32, #tpu.memory_space<vmem>>, vector<8x256xf32>
    %cst_83 = arith.constant dense<0.000000e+00> : vector<8x256xf32>
    %336 = tpu.matmul %334, %47, %cst_83 {dimension_numbers = #tpu.dot_dimension_numbers<[1], [0], [0], [1], [0, 0, 1, 1], [], []>} : vector<8x64xf32>, vector<64x256xf32>, vector<8x256xf32> -> vector<8x256xf32>
    %337 = arith.addf %335, %336 : vector<8x256xf32>
    %338 = vector.extract_strided_slice %337 {offsets = [0, 0], sizes = [8, 192], strides = [1, 1]} : vector<8x256xf32> to vector<8x192xf32>
    %339 = arith.negf %338 : vector<8x192xf32>
    %340 = math.exp %339 : vector<8x192xf32>
    %cst_84 = arith.constant 1.000000e+00 : f32
    %341 = vector.broadcast %cst_84 : f32 to vector<8x192xf32>
    %342 = arith.addf %341, %340 : vector<8x192xf32>
    %343 = arith.divf %341, %342 : vector<8x192xf32>
    %344 = vector.extract_strided_slice %337 {offsets = [0, 192], sizes = [8, 64], strides = [1, 1]} : vector<8x256xf32> to vector<8x64xf32>
    %345 = math.tanh %344 : vector<8x64xf32>
    %346 = vector.extract_strided_slice %343 {offsets = [0, 64], sizes = [8, 64], strides = [1, 1]} : vector<8x192xf32> to vector<8x64xf32>
    %347 = arith.mulf %346, %331 : vector<8x64xf32>
    %348 = vector.extract_strided_slice %343 {offsets = [0, 0], sizes = [8, 64], strides = [1, 1]} : vector<8x192xf32> to vector<8x64xf32>
    %349 = arith.mulf %348, %345 : vector<8x64xf32>
    %350 = arith.addf %347, %349 : vector<8x64xf32>
    %351 = vector.extract_strided_slice %343 {offsets = [0, 128], sizes = [8, 64], strides = [1, 1]} : vector<8x192xf32> to vector<8x64xf32>
    %352 = math.tanh %350 : vector<8x64xf32>
    %353 = arith.mulf %351, %352 : vector<8x64xf32>
    %c0_85 = arith.constant 0 : index
    %c0_86 = arith.constant 0 : index
    %354 = vector.load %arg9[%c0_85, %c0_86] : memref<64x32xf32, #tpu.memory_space<vmem>>, vector<64x32xf32>
    %cst_87 = arith.constant dense<0.000000e+00> : vector<8x32xf32>
    %355 = tpu.matmul %353, %354, %cst_87 {dimension_numbers = #tpu.dot_dimension_numbers<[1], [0], [0], [1], [0, 0, 1, 1], [], []>} : vector<8x64xf32>, vector<64x32xf32>, vector<8x32xf32> -> vector<8x32xf32>
    %c0_88 = arith.constant 0 : index
    %c0_89 = arith.constant 0 : index
    %356 = vector.load %arg10[%c0_88, %c0_89] : memref<1x32xf32, #tpu.memory_space<vmem>>, vector<1x32xf32>
    %357 = vector.broadcast %356 : vector<1x32xf32> to vector<8x32xf32>
    %358 = arith.addf %355, %357 : vector<8x32xf32>
    %cst_90 = arith.constant 0.000000e+00 : f32
    %359 = vector.broadcast %cst_90 : f32 to vector<8x32xf32>
    %360 = arith.maximumf %358, %359 : vector<8x32xf32>
    %c0_91 = arith.constant 0 : index
    %c0_92 = arith.constant 0 : index
    %361 = vector.load %arg11[%c0_91, %c0_92] : memref<32x1xf32, #tpu.memory_space<vmem>>, vector<32x1xf32>
    %cst_93 = arith.constant dense<0.000000e+00> : vector<8x1xf32>
    %362 = tpu.matmul %360, %361, %cst_93 {dimension_numbers = #tpu.dot_dimension_numbers<[1], [0], [0], [1], [0, 0, 1, 1], [], []>} : vector<8x32xf32>, vector<32x1xf32>, vector<8x1xf32> -> vector<8x1xf32>
    %c0_94 = arith.constant 0 : index
    %c0_95 = arith.constant 0 : index
    %363 = vector.load %arg12[%c0_94, %c0_95] : memref<1x1xf32, #tpu.memory_space<vmem>>, vector<1x1xf32>
    %364 = vector.broadcast %363 : vector<1x1xf32> to vector<8x1xf32>
    %365 = arith.addf %362, %364 : vector<8x1xf32>
    %c0_96 = arith.constant 0 : index
    %c0_97 = arith.constant 0 : index
    %c0_98 = arith.constant 0 : index
    %366 = vector.load %arg13[%c0_96, %c0_97, %c0_98] : memref<1x8x1xf32, #tpu.memory_space<vmem>>, vector<1x8x1xf32>
    %367 = vector.shape_cast %366 : vector<1x8x1xf32> to vector<8x1xf32>
    %368 = vector.shape_cast %365 : vector<8x1xf32> to vector<1x8x1xf32>
    tpu.vector_store %arg13[%c0_96, %c0_97, %c0_98], %368 {strides = array<i32>} : memref<1x8x1xf32, #tpu.memory_space<vmem>>, vector<1x8x1xf32>,
    return
  }
  func.func @transform_0(%arg0: i32) -> (i32, i32, i32) {
    %c0_i32 = arith.constant 0 : i32
    %c0_i32_0 = arith.constant 0 : i32
    %c0_i32_1 = arith.constant 0 : i32
    return %arg0, %c0_i32, %c0_i32_0 : i32, i32, i32
  }
  func.func @transform_1(%arg0: i32) -> (i32, i32) {
    %c0_i32 = arith.constant 0 : i32
    %c0_i32_0 = arith.constant 0 : i32
    %c0_i32_1 = arith.constant 0 : i32
    return %c0_i32, %c0_i32_0 : i32, i32
  }
  func.func @transform_2(%arg0: i32) -> (i32, i32) {
    %c0_i32 = arith.constant 0 : i32
    %c0_i32_0 = arith.constant 0 : i32
    %c0_i32_1 = arith.constant 0 : i32
    return %c0_i32, %c0_i32_0 : i32, i32
  }
  func.func @transform_3(%arg0: i32) -> (i32, i32) {
    %c0_i32 = arith.constant 0 : i32
    %c0_i32_0 = arith.constant 0 : i32
    %c0_i32_1 = arith.constant 0 : i32
    return %c0_i32, %c0_i32_0 : i32, i32
  }
  func.func @transform_4(%arg0: i32) -> (i32, i32) {
    %c0_i32 = arith.constant 0 : i32
    %c0_i32_0 = arith.constant 0 : i32
    %c0_i32_1 = arith.constant 0 : i32
    return %c0_i32, %c0_i32_0 : i32, i32
  }
  func.func @transform_5(%arg0: i32) -> (i32, i32) {
    %c0_i32 = arith.constant 0 : i32
    %c0_i32_0 = arith.constant 0 : i32
    %c0_i32_1 = arith.constant 0 : i32
    return %c0_i32, %c0_i32_0 : i32, i32
  }
  func.func @transform_6(%arg0: i32) -> (i32, i32) {
    %c0_i32 = arith.constant 0 : i32
    %c0_i32_0 = arith.constant 0 : i32
    %c0_i32_1 = arith.constant 0 : i32
    return %c0_i32, %c0_i32_0 : i32, i32
  }
  func.func @transform_7(%arg0: i32) -> (i32, i32) {
    %c0_i32 = arith.constant 0 : i32
    %c0_i32_0 = arith.constant 0 : i32
    %c0_i32_1 = arith.constant 0 : i32
    return %c0_i32, %c0_i32_0 : i32, i32
  }
  func.func @transform_8(%arg0: i32) -> (i32, i32) {
    %c0_i32 = arith.constant 0 : i32
    %c0_i32_0 = arith.constant 0 : i32
    %c0_i32_1 = arith.constant 0 : i32
    return %c0_i32, %c0_i32_0 : i32, i32
  }
  func.func @transform_9(%arg0: i32) -> (i32, i32) {
    %c0_i32 = arith.constant 0 : i32
    %c0_i32_0 = arith.constant 0 : i32
    %c0_i32_1 = arith.constant 0 : i32
    return %c0_i32, %c0_i32_0 : i32, i32
  }
  func.func @transform_10(%arg0: i32) -> (i32, i32) {
    %c0_i32 = arith.constant 0 : i32
    %c0_i32_0 = arith.constant 0 : i32
    %c0_i32_1 = arith.constant 0 : i32
    return %c0_i32, %c0_i32_0 : i32, i32
  }
  func.func @transform_11(%arg0: i32) -> (i32, i32) {
    %c0_i32 = arith.constant 0 : i32
    %c0_i32_0 = arith.constant 0 : i32
    %c0_i32_1 = arith.constant 0 : i32
    return %c0_i32, %c0_i32_0 : i32, i32
  }
  func.func @transform_12(%arg0: i32) -> (i32, i32, i32) {
    %c0_i32 = arith.constant 0 : i32
    %c0_i32_0 = arith.constant 0 : i32
    %c0_i32_1 = arith.constant 0 : i32
    return %arg0, %c0_i32, %c0_i32_0 : i32, i32, i32
  }
}

</mosaic_0001>

<bundles_post_ra>
// kernel: tpu_custom_call.1
= control target key start
LH: loop header
LB: loop body
LE: loop exit
PB: predicated region body
PF: predicated region fallthrough
CT: control target
= control target key end

     0   :  { %v3520_v0 = vmov 0   ;;  %v3521_v19 = vmov 0.0|0.0   ;;  %v142_v56 = vlaneseq  ;;  %vm283_vm0 = vcmask 523264   ;;  %s4494_s0 = inlined_call_operand.vmem [shape: f32[1,144,1], index: 0, kind: input, shape index: {}]   ;;  %s4495_s3 = inlined_call_operand.vmem [shape: f32[192,32], index: 3, kind: input, shape index: {}]   ;;  %s4496_s1 = inlined_call_operand.vmem [shape: f32[3,64], index: 1, kind: input, shape index: {}]   ;;  %s4497_s2 = inlined_call_operand.vmem [shape: f32[1,64], index: 2, kind: input, shape index: {}]   ;;  %s4498_s5 = inlined_call_operand.vmem [shape: f32[32,256], index: 5, kind: input, shape index: {}]   ;;  %s4499_s6 = inlined_call_operand.vmem [shape: f32[64,256], index: 6, kind: input, shape index: {}]   ;;  %s4500_s4 = inlined_call_operand.vmem [shape: f32[1,32], index: 4, kind: input, shape index: {}]   ;;  %s4501_s7 = inlined_call_operand.vmem [shape: f32[1,256], index: 7, kind: input, shape index: {}]   ;;  %s4502_s8 = inlined_call_operand.vmem [shape: f32[64,32], index: 8, kind: input, shape index: {}]   ;;  %s4503_s10 = inlined_call_operand.vmem [shape: f32[32,1], index: 10, kind: input, shape index: {}]   ;;  %s4504_s11 = inlined_call_operand.<no memory space> [shape: f32[1,1], index: 11, kind: input, shape index: {}]   ;;  %s4505_s9 = inlined_call_operand.vmem [shape: f32[1,32], index: 9, kind: input, shape index: {}]   ;;  %s4506_s12 = inlined_call_operand.vmem [shape: f32[1,8,1], index: 12, kind: output, shape index: {}]  }
   0x1   :  { %3327 = vset.pattern.permute.xlu1 %v3520_v0  ;;  %3326 = vset.pattern.permute.xlu0 %v3520_v0  ;;  %v45_v1 = vld [vmem:[%s4494_s0 + $0x10] sm:$0xff]  ;;  %v43_v2 = vld [vmem:[%s4494_s0] sm:$0xff]  ;;  %v46_v3 = vld [vmem:[%s4494_s0 + $0x18] sm:$0xff]  ;;  %vm645_vm1 = vcmask 261120   ;;  %vm3524_vm2 = vmmov 0   ;;  %vm2804_vm3 = vcmask 7168  }
   0x2   :  { %74 = vperm.xlu1 %3327, %v45_v1   ;;  %64 = vperm.xlu0 %3326, %v43_v2   ;;  %v44_v4 = vld [vmem:[%s4494_s0 + $0x8] sm:$0xff]  ;;  %v47_v6 = vld [vmem:[%s4494_s0 + $0x20] sm:$0xff]  ;;  %v50_v7 = vld [vmem:[%s4494_s0 + $0x38] sm:$0xff]  ;;  %v3728_v57 = vshrl.u32 %v142_v56, 7 }
   0x3   :  { %v48_v5 = vld [vmem:[%s4494_s0 + $0x28] sm:$0xff]  ;;  %v49_v8 = vld [vmem:[%s4494_s0 + $0x30] sm:$0xff]  ;;  %v51_v10 = vld [vmem:[%s4494_s0 + $0x40] sm:$0xff]  ;;  %2939 = vmatprep.subr.bf16.mxu0 %v3521_v19 }
   0x4   :  { %v52_v9 = vld [vmem:[%s4494_s0 + $0x48] sm:$0xff]  ;;  %v54_v11 = vld [vmem:[%s4494_s0 + $0x58] sm:$0xff]  ;;  %v53_v12 = vld [vmem:[%s4494_s0 + $0x50] sm:$0xff]  ;;  %v169_v58 = vsub.s32 1, %v3728_v57  ;;  %v210_v59 = vsub.s32 2, %v3728_v57  ;;  %v144_v61 = vsub.s32 0, %v3728_v57 }
   0x5   :  { %v56_v13 = vld [vmem:[%s4494_s0 + $0x68] sm:$0xff]  ;;  %v55_v14 = vld [vmem:[%s4494_s0 + $0x60] sm:$0xff]  ;;  %v58_v15 = vld [vmem:[%s4494_s0 + $0x78] sm:$0xff] }
   0x6   :  { %79 = vperm.xlu1 %3327, %v46_v3   ;;  %69 = vperm.xlu0 %3326, %v44_v4   ;;  %v57_v16 = vld [vmem:[%s4494_s0 + $0x70] sm:$0xff]  ;;  %v60_v17 = vld [vmem:[%s4494_s0 + $0x88] sm:$0xff]  ;;  %v59_v18 = vld [vmem:[%s4494_s0 + $0x80] sm:$0xff] }
   0x7   :  { %v400_v20 = vld [vmem:[%s4495_s3] sm:$0xff]  ;;  %v401_v21 = vld [vmem:[%s4495_s3 + $0x8] sm:$0xff]  ;;  %v402_v22 = vld [vmem:[%s4495_s3 + $0x10] sm:$0xff] }
   0x8   :  { %v2940_v23 = vpack.c.bf16 %v401_v21, %v400_v20  ;;  %v403_v24 = vld [vmem:[%s4495_s3 + $0x18] sm:$0xff]  ;;  %v404_v26 = vld [vmem:[%s4495_s3 + $0x20] sm:$0xff]  ;;  %v405_v27 = vld [vmem:[%s4495_s3 + $0x28] sm:$0xff] }
   0x9   :  { %v2943_v25 = vpack.c.bf16 %v403_v24, %v402_v22  ;;  %v2946_v28 = vpack.c.bf16 %v405_v27, %v404_v26  ;;  %v406_v29 = vld [vmem:[%s4495_s3 + $0x30] sm:$0xff]  ;;  %v407_v30 = vld [vmem:[%s4495_s3 + $0x38] sm:$0xff]  ;;  %v408_v32 = vld [vmem:[%s4495_s3 + $0x40] sm:$0xff] }
   0xa   :  { %89 = vperm.xlu1 %3327, %v48_v5   ;;  %84 = vperm.xlu0 %3326, %v47_v6   ;;  %v2949_v31 = vpack.c.bf16 %v407_v30, %v406_v29  ;;  %v409_v33 = vld [vmem:[%s4495_s3 + $0x48] sm:$0xff]  ;;  %v410_v35 = vld [vmem:[%s4495_s3 + $0x50] sm:$0xff]  ;;  %v411_v36 = vld [vmem:[%s4495_s3 + $0x58] sm:$0xff] }
   0xb   :  { %2941 = vmatpush1.bf16.msra.mxu0 %v2940_v23  ;;  %v2952_v34 = vpack.c.bf16 %v409_v33, %v408_v32  ;;  %v2955_v37 = vpack.c.bf16 %v411_v36, %v410_v35  ;;  %v412_v38 = vld [vmem:[%s4495_s3 + $0x60] sm:$0xff]  ;;  %v413_v39 = vld [vmem:[%s4495_s3 + $0x68] sm:$0xff]  ;;  %v414_v41 = vld [vmem:[%s4495_s3 + $0x70] sm:$0xff] }
   0xc   :  { %2942 = vmatprep.subr.bf16.mxu0 %v3521_v19  ;;  %v2958_v40 = vpack.c.bf16 %v413_v39, %v412_v38  ;;  %v415_v42 = vld [vmem:[%s4495_s3 + $0x78] sm:$0xff]  ;;  %v416_v44 = vld [vmem:[%s4495_s3 + $0x80] sm:$0xff]  ;;  %v417_v45 = vld [vmem:[%s4495_s3 + $0x88] sm:$0xff] }
   0xd   :  { %v2961_v43 = vpack.c.bf16 %v415_v42, %v414_v41  ;;  %v2964_v46 = vpack.c.bf16 %v417_v45, %v416_v44  ;;  %v418_v47 = vld [vmem:[%s4495_s3 + $0x90] sm:$0xff]  ;;  %v419_v48 = vld [vmem:[%s4495_s3 + $0x98] sm:$0xff]  ;;  %v420_v50 = vld [vmem:[%s4495_s3 + $0xa0] sm:$0xff] }
   0xe   :  { %99 = vperm.xlu1 %3327, %v50_v7   ;;  %94 = vperm.xlu0 %3326, %v49_v8   ;;  %v2967_v49 = vpack.c.bf16 %v419_v48, %v418_v47  ;;  %v421_v51 = vld [vmem:[%s4495_s3 + $0xa8] sm:$0xff]  ;;  %v422_v53 = vld [vmem:[%s4495_s3 + $0xb0] sm:$0xff]  ;;  %v423_v54 = vld [vmem:[%s4495_s3 + $0xb8] sm:$0xff] }
   0xf   :  { %2944 = vmatpush1.bf16.msra.mxu0 %v2943_v25  ;;  %v2970_v52 = vpack.c.bf16 %v421_v51, %v420_v50  ;;  %v2973_v55 = vpack.c.bf16 %v423_v54, %v422_v53  ;;  %v61_v60 = vld [vmem:[%s4496_s1] sm:$0x7] }
  0x10   :  { %2945 = vmatprep.subr.bf16.mxu0 %v3521_v19  ;;  %v3738_v62 = vrot.slane %v61_v60, %v169_v58  ;;  %v3740_v1 = vrot.slane %v61_v60, %v210_v59  ;;  %v3744_v2 = vrot.slane %v61_v60, %v144_v61 }
  0x12   :  { %109 = vperm.xlu1 %3327, %v52_v9   ;;  %104 = vperm.xlu0 %3326, %v51_v10   ;;  %v3522_v10 = vmov 0.0  }
  0x13   :  { %2947 = vmatpush1.bf16.msra.mxu0 %v2946_v28  ;;  %284 = vst.msk [vmem:[#allocation2] sm:$0xff] %vm283_vm0, %v3522_v10  ;;  %285 = vst.msk [vmem:[#allocation2 + $0x88] sm:$0xff] %vm283_vm0, %v3522_v10  ;;  %1188 = vmatprep.mubr.f32.mxu1 %v3522_v10 }
  0x14   :  { %2948 = vmatprep.subr.bf16.mxu0 %v3521_v19 }
  0x16   :  { %119 = vperm.xlu1 %3327, %v54_v11   ;;  %114 = vperm.xlu0 %3326, %v53_v12  }
  0x17   :  { %2950 = vmatpush1.bf16.msra.mxu0 %v2949_v31 }
  0x18   :  { %2951 = vmatprep.subr.bf16.mxu0 %v3521_v19 }
  0x1a   :  { %129 = vperm.xlu1 %3327, %v56_v13   ;;  %124 = vperm.xlu0 %3326, %v55_v14  }
  0x1b   :  { %2953 = vmatpush1.bf16.msra.mxu0 %v2952_v34 }
  0x1c   :  { %2954 = vmatprep.subr.bf16.mxu0 %v3521_v19 }
  0x1e   :  { %139 = vperm.xlu1 %3327, %v58_v15   ;;  %134 = vperm.xlu0 %3326, %v57_v16   ;;  %v3762_v16 = vld [vmem:[%s4497_s2] ss:$0 sm:$0xff]  ;;  %s3523_s2 = smov 64  }
  0x1f   :  { %2956 = vmatpush1.bf16.msra.mxu0 %v2955_v37 }
  0x20   :  { %2957 = vmatprep.subr.bf16.mxu0 %v3521_v19 }
  0x22   :  { %205 = vperm.xlu1 %3327, %v60_v17   ;;  %164 = vperm.xlu0 %3326, %v59_v18  }
  0x23   :  { %2959 = vmatpush1.bf16.msra.mxu0 %v2958_v40 }
  0x24   :  { %2960 = vmatprep.subr.bf16.mxu0 %v3521_v19 }
  0x27   :  { %2962 = vmatpush1.bf16.msra.mxu0 %v2961_v43 }
  0x28   :  { %2963 = vmatprep.subr.bf16.mxu0 %v3521_v19 }
  0x2b   :  { %2965 = vmatpush1.bf16.msra.mxu0 %v2964_v46 }
  0x2c   :  { %2966 = vmatprep.subr.bf16.mxu0 %v3521_v19 }
  0x2f   :  { %2968 = vmatpush1.bf16.msra.mxu0 %v2967_v49 }
  0x30   :  { %2969 = vmatprep.subr.bf16.mxu0 %v3521_v19 }
  0x33   :  { %2971 = vmatpush1.bf16.msra.mxu0 %v2970_v52 }
  0x34   :  { %2972 = vmatprep.subr.bf16.mxu0 %v3521_v19 }
  0x37   :  { %2974 = vmatpush1.bf16.msra.mxu0 %v2973_v55 }
  0x81   :  { %v75_v63 = vpop.permute.xlu1 %74  ;;  %v65_v0 = vpop.permute.xlu0 %64 }
  0x82   :  { %v172_v3 = vmul.f32 %v3738_v62, %v75_v63  ;;  %v148_v4 = vmul.f32 %v3744_v2, %v75_v63  ;;  %v212_v11 = vmul.f32 %v3740_v1, %v75_v63  ;;  %v146_v12 = vmul.f32 %v3744_v2, %v65_v0 }
  0x85   :  { %v80_v5 = vpop.permute.xlu1 %79  ;;  %v70_v6 = vpop.permute.xlu0 %69 }
  0x86   :  { %v173_v7 = vmul.f32 %v3738_v62, %v80_v5  ;;  %v213_v8 = vmul.f32 %v3740_v1, %v80_v5  ;;  %v147_v9 = vmul.f32 %v3744_v2, %v70_v6  ;;  %v171_v13 = vmul.f32 %v3738_v62, %v70_v6 }
  0x87   :  { %v149_v21 = vmul.f32 %v3744_v2, %v80_v5 }
  0x88   :  { %v188_v14 = vadd.f32 %v172_v3, %v147_v9  ;;  %v189_v15 = vadd.f32 %v173_v7, %v148_v4  ;;  %v187_v17 = vadd.f32 %v171_v13, %v146_v12 }
  0x89   :  { %v90_v18 = vpop.permute.xlu1 %89  ;;  %v85_v20 = vpop.permute.xlu0 %84 }
  0x8a   :  { %v229_v22 = vadd.f32 %v213_v8, %v188_v14  ;;  %v175_v23 = vmul.f32 %v3738_v62, %v90_v18  ;;  %v228_v24 = vadd.f32 %v212_v11, %v187_v17  ;;  %v150_v25 = vmul.f32 %v3744_v2, %v85_v20 }
  0x8b   :  { %v174_v26 = vmul.f32 %v3738_v62, %v85_v20  ;;  %v214_v27 = vmul.f32 %v3740_v1, %v85_v20  ;;  %v215_v30 = vmul.f32 %v3740_v1, %v90_v18  ;;  %v151_v36 = vmul.f32 %v3744_v2, %v90_v18 }
  0x8c   :  { %v252_v28 = vadd.f32 %v3762_v16, %v229_v22  ;;  %v251_v29 = vadd.f32 %v3762_v16, %v228_v24  ;;  %v191_v38 = vadd.f32 %v175_v23, %v150_v25 }
  0x8d   :  { %v190_v31 = vadd.f32 %v174_v26, %v149_v21  ;;  %v230_v32 = vadd.f32 %v214_v27, %v189_v15  ;;  %v100_v33 = vpop.permute.xlu1 %99  ;;  %v95_v34 = vpop.permute.xlu0 %94 }
  0x8e   :  { %v268_v35 = vmax.f32 %v252_v28, 0.0  ;;  %v267_v37 = vmax.f32 %v251_v29, 0.0  ;;  %v177_v41 = vmul.f32 %v3738_v62, %v100_v33  ;;  %v152_v42 = vmul.f32 %v3744_v2, %v95_v34 }
  0x8f   :  { %v231_v39 = vadd.f32 %v215_v30, %v190_v31  ;;  %v253_v40 = vadd.f32 %v3762_v16, %v230_v32  ;;  %v176_v43 = vmul.f32 %v3738_v62, %v95_v34  ;;  %v216_v44 = vmul.f32 %v3740_v1, %v95_v34 }
  0x90   :  { %287 = vst.msk [vmem:[#allocation2 + $0x10] sm:$0xff] %vm283_vm0, %v268_v35  ;;  %286 = vst.msk [vmem:[#allocation2 + $0x8] sm:$0xff] %vm283_vm0, %v267_v37  ;;  %v153_v49 = vmul.f32 %v3744_v2, %v100_v33  ;;  %v217_v50 = vmul.f32 %v3740_v1, %v100_v33  ;;  %v193_v59 = vadd.f32 %v177_v41, %v152_v42 }
  0x91   :  { %v254_v45 = vadd.f32 %v3762_v16, %v231_v39  ;;  %v269_v46 = vmax.f32 %v253_v40, 0.0  ;;  %v110_v47 = vpop.permute.xlu1 %109  ;;  %v105_v48 = vpop.permute.xlu0 %104  ;;  %v192_v51 = vadd.f32 %v176_v43, %v151_v36  ;;  %v232_v52 = vadd.f32 %v216_v44, %v191_v38 }
  0x92   :  { %v179_v54 = vmul.f32 %v3738_v62, %v110_v47  ;;  %v154_v55 = vmul.f32 %v3744_v2, %v105_v48  ;;  %v178_v56 = vmul.f32 %v3738_v62, %v105_v48  ;;  %v218_v0 = vmul.f32 %v3740_v1, %v105_v48 }
  0x93   :  { %v270_v53 = vmax.f32 %v254_v45, 0.0  ;;  %288 = vst.msk [vmem:[#allocation2 + $0x18] sm:$0xff] %vm283_vm0, %v269_v46  ;;  %v233_v60 = vadd.f32 %v217_v50, %v192_v51  ;;  %v255_v63 = vadd.f32 %v3762_v16, %v232_v52  ;;  %v219_v3 = vmul.f32 %v3740_v1, %v110_v47 }
  0x94   :  { %v194_v4 = vadd.f32 %v178_v56, %v153_v49  ;;  %v155_v9 = vmul.f32 %v3744_v2, %v110_v47  ;;  %v234_v11 = vadd.f32 %v218_v0, %v193_v59  ;;  %v195_v12 = vadd.f32 %v179_v54, %v154_v55 }
  0x95   :  { %289 = vst.msk [vmem:[#allocation2 + $0x20] sm:$0xff] %vm283_vm0, %v270_v53  ;;  %v120_v5 = vpop.permute.xlu1 %119  ;;  %v115_v6 = vpop.permute.xlu0 %114  ;;  %v256_v7 = vadd.f32 %v3762_v16, %v233_v60  ;;  %v271_v8 = vmax.f32 %v255_v63, 0.0 }
  0x96   :  { %v235_v13 = vadd.f32 %v219_v3, %v194_v4  ;;  %v181_v14 = vmul.f32 %v3738_v62, %v120_v5  ;;  %v156_v15 = vmul.f32 %v3744_v2, %v115_v6  ;;  %v257_v20 = vadd.f32 %v3762_v16, %v234_v11 }
  0x97   :  { %v3795_v17 = vld [vmem:[#allocation2 + $0x10] sm:$0xff]  ;;  %v272_v18 = vmax.f32 %v256_v7, 0.0  ;;  %290 = vst.msk [vmem:[#allocation2 + $0x28] sm:$0xff] %vm283_vm0, %v271_v8  ;;  %v180_v21 = vmul.f32 %v3738_v62, %v115_v6  ;;  %v220_v22 = vmul.f32 %v3740_v1, %v115_v6  ;;  %v3801_v23 = vld [vmem:[#allocation2 + $0x8] sm:$0xff]  ;;  %v221_v28 = vmul.f32 %v3740_v1, %v120_v5 }
  0x98   :  { %338 = vrot.lane.b32.xlu1 %v3795_v17, %s3523_s2  ;;  %2812 = vmatprep.mubr.msk.f32.mxu0 %vm283_vm0, %v3795_v17  ;;  %v258_v24 = vadd.f32 %v3762_v16, %v235_v13  ;;  %v273_v27 = vmax.f32 %v257_v20, 0.0  ;;  %v157_v32 = vmul.f32 %v3744_v2, %v120_v5  ;;  %v197_v33 = vadd.f32 %v181_v14, %v156_v15 }
  0x99   :  { %336 = vrot.lane.b32.xlu0 %v3801_v23, %s3523_s2  ;;  %v130_v25 = vpop.permute.xlu1 %129  ;;  %v125_v26 = vpop.permute.xlu0 %124  ;;  %291 = vst.msk [vmem:[#allocation2 + $0x30] sm:$0xff] %vm283_vm0, %v272_v18  ;;  %v196_v29 = vadd.f32 %v180_v21, %v155_v9  ;;  %v236_v30 = vadd.f32 %v220_v22, %v195_v12 }
  0x9a   :  { %v274_v31 = vmax.f32 %v258_v24, 0.0  ;;  %292 = vst.msk [vmem:[#allocation2 + $0x38] sm:$0xff] %vm283_vm0, %v273_v27  ;;  %v182_v36 = vmul.f32 %v3738_v62, %v125_v26  ;;  %v222_v37 = vmul.f32 %v3740_v1, %v125_v26  ;;  %v3817_v38 = vld [vmem:[#allocation2 + $0x18] sm:$0xff]  ;;  %v183_v40 = vmul.f32 %v3738_v62, %v130_v25 }
  0x9b   :  { %v237_v34 = vadd.f32 %v221_v28, %v196_v29  ;;  %v259_v35 = vadd.f32 %v3762_v16, %v236_v30  ;;  %v223_v41 = vmul.f32 %v3740_v1, %v130_v25  ;;  %v158_v42 = vmul.f32 %v3744_v2, %v125_v26 }
  0x9c   :  { %v3819_v39 = vld [vmem:[#allocation2 + $0x20] sm:$0xff]  ;;  %293 = vst.msk [vmem:[#allocation2 + $0x40] sm:$0xff] %vm283_vm0, %v274_v31  ;;  %v198_v47 = vadd.f32 %v182_v36, %v157_v32  ;;  %v238_v48 = vadd.f32 %v222_v37, %v197_v33  ;;  %v159_v49 = vmul.f32 %v3744_v2, %v130_v25 }
  0x9d   :  { %340 = vrot.lane.b32.xlu0 %v3817_v38, %s3523_s2  ;;  %342 = vrot.lane.b32.xlu1 %v3819_v39, %s3523_s2  ;;  %v140_v43 = vpop.permute.xlu1 %139  ;;  %v135_v44 = vpop.permute.xlu0 %134  ;;  %v260_v45 = vadd.f32 %v3762_v16, %v237_v34  ;;  %v275_v46 = vmax.f32 %v259_v35, 0.0  ;;  %v199_v59 = vadd.f32 %v183_v40, %v158_v42  ;;  %v626_v40 = vld [vmem:[%s4498_s5 + $0x8] sm:$0xff] }
  0x9e   :  { %v185_v50 = vmul.f32 %v3738_v62, %v140_v43  ;;  %v160_v51 = vmul.f32 %v3744_v2, %v135_v44  ;;  %v239_v53 = vadd.f32 %v223_v41, %v198_v47  ;;  %v261_v54 = vadd.f32 %v3762_v16, %v238_v48  ;;  %v3836_v56 = vld [vmem:[#allocation2 + $0x28] sm:$0xff]  ;;  %v628_v41 = vld [vmem:[%s4498_s5 + $0x18] sm:$0xff]  ;;  %v302_v47 = vld [vmem:[#allocation2] sm:$0xff] }
  0x9f   :  { %v276_v52 = vmax.f32 %v260_v45, 0.0  ;;  %294 = vst.msk [vmem:[#allocation2 + $0x48] sm:$0xff] %vm283_vm0, %v275_v46  ;;  %v184_v55 = vmul.f32 %v3738_v62, %v135_v44  ;;  %v161_v60 = vmul.f32 %v3744_v2, %v140_v43  ;;  %v224_v63 = vmul.f32 %v3740_v1, %v135_v44  ;;  %v627_v44 = vld [vmem:[%s4498_s5 + $0x10] sm:$0xff]  ;;  %v630_v45 = vld [vmem:[%s4498_s5 + $0x28] sm:$0xff]  ;;  %v632_v46 = vld [vmem:[%s4498_s5 + $0x38] sm:$0xff] }
  0xa0   :  { %v3842_v0 = vld [vmem:[#allocation2 + $0x30] sm:$0xff]  ;;  %v262_v4 = vadd.f32 %v3762_v16, %v239_v53  ;;  %v277_v5 = vmax.f32 %v261_v54, 0.0  ;;  %v225_v6 = vmul.f32 %v3740_v1, %v140_v43  ;;  %v201_v8 = vadd.f32 %v185_v50, %v160_v51  ;;  %v625_v43 = vld [vmem:[%s4498_s5] sm:$0xff] }
  0xa1   :  { %344 = vrot.lane.b32.xlu0 %v3836_v56, %s3523_s2  ;;  %v165_v3 = vpop.permute.xlu0 %164  ;;  %295 = vst.msk [vmem:[#allocation2 + $0x50] sm:$0xff] %vm283_vm0, %v276_v52  ;;  %v200_v7 = vadd.f32 %v184_v55, %v159_v49  ;;  %346 = vrot.lane.b32.xlu1 %v3842_v0, %s3523_s2  ;;  %v206_v2 = vpop.permute.xlu1 %205  ;;  %v240_v9 = vadd.f32 %v224_v63, %v199_v59  ;;  %v3852_v15 = vld [vmem:[#allocation2 + $0x38] sm:$0xff]  ;;  %v629_v51 = vld [vmem:[%s4498_s5 + $0x20] sm:$0xff]  ;;  %v631_v52 = vld [vmem:[%s4498_s5 + $0x30] sm:$0xff] }
  0xa2   :  { %v186_v11 = vmul.f32 %v3738_v62, %v165_v3  ;;  %v226_v12 = vmul.f32 %v3740_v1, %v165_v3  ;;  %v278_v13 = vmax.f32 %v262_v4, 0.0  ;;  %296 = vst.msk [vmem:[#allocation2 + $0x58] sm:$0xff] %vm283_vm0, %v277_v5  ;;  %v227_v21 = vmul.f32 %v3740_v1, %v206_v2 }
  0xa3   :  { %v241_v14 = vadd.f32 %v225_v6, %v200_v7  ;;  %v3854_v18 = vld [vmem:[#allocation2 + $0x40] sm:$0xff]  ;;  %v263_v20 = vadd.f32 %v3762_v16, %v240_v9  ;;  %v2975_v42 = vpack.c.bf16 %v628_v41, %v626_v40  ;;  %v2977_v48 = vpack.c.bf16 %v627_v44, %v625_v43  ;;  %v898_v40 = vld [vmem:[%s4499_s6 + $0x58] sm:$0xff]  ;;  %v897_v43 = vld [vmem:[%s4499_s6 + $0x50] sm:$0xff] }
  0xa4   :  { %v202_v22 = vadd.f32 %v186_v11, %v161_v60  ;;  %v242_v24 = vadd.f32 %v226_v12, %v201_v8  ;;  %297 = vst.msk [vmem:[#allocation2 + $0x60] sm:$0xff] %vm283_vm0, %v278_v13  ;;  %v2979_v50 = vpack.c.bf16 %v632_v46, %v630_v45  ;;  %v2981_v55 = vpack.c.bf16 %v631_v52, %v629_v51  ;;  %v895_v41 = vld [vmem:[%s4499_s6 + $0x40] sm:$0xff]  ;;  %v900_v45 = vld [vmem:[%s4499_s6 + $0x68] sm:$0xff]  ;;  %v902_v46 = vld [vmem:[%s4499_s6 + $0x78] sm:$0xff] }
  0xa5   :  { %348 = vrot.lane.b32.xlu0 %v3852_v15, %s3523_s2  ;;  %v264_v62 = vadd.f32 %v3762_v16, %v241_v14  ;;  %350 = vrot.lane.b32.xlu1 %v3854_v18, %s3523_s2  ;;  %v279_v25 = vmax.f32 %v263_v20, 0.0  ;;  %v4038_v44 = vpack.c.bf16 %v897_v43, %v895_v41  ;;  %v4064_v51 = vld [vmem:[%s4500_s4] ss:$0 sm:$0xff] }
  0xa6   :  { %v243_v26 = vadd.f32 %v227_v21, %v202_v22  ;;  %v265_v27 = vadd.f32 %v3762_v16, %v242_v24  ;;  %v3865_v29 = vld [vmem:[#allocation2 + $0x48] sm:$0xff]  ;;  %2976 = vmatprep.subr.bf16.mxu0 %v2975_v42 }
  0xa7   :  { %v280_v28 = vmax.f32 %v264_v62, 0.0  ;;  %298 = vst.msk [vmem:[#allocation2 + $0x68] sm:$0xff] %vm283_vm0, %v279_v25  ;;  %v319_v24 = vld [vmem:[#allocation2 + $0x88] sm:$0xff] }
  0xa8   :  { %v266_v1 = vadd.f32 %v3762_v16, %v243_v26  ;;  %v281_v30 = vmax.f32 %v265_v27, 0.0  ;;  %v3871_v31 = vld [vmem:[#allocation2 + $0x50] sm:$0xff]  ;;  %v888_v27 = vld [vmem:[%s4499_s6 + $0x8] sm:$0xff] }
  0xa9   :  { %352 = vrot.lane.b32.xlu0 %v3865_v29, %s3523_s2  ;;  %299 = vst.msk [vmem:[#allocation2 + $0x70] sm:$0xff] %vm283_vm0, %v280_v28  ;;  %354 = vrot.lane.b32.xlu1 %v3871_v31, %s3523_s2  ;;  %v3877_v33 = vld [vmem:[#allocation2 + $0x58] sm:$0xff] }
  0xaa   :  { %v282_v32 = vmax.f32 %v266_v1, 0.0  ;;  %300 = vst.msk [vmem:[#allocation2 + $0x78] sm:$0xff] %vm283_vm0, %v281_v30  ;;  %v890_v28 = vld [vmem:[%s4499_s6 + $0x18] sm:$0xff]  ;;  %v889_v30 = vld [vmem:[%s4499_s6 + $0x10] sm:$0xff] }
  0xab   :  { %v3882_v16 = vld [vmem:[#allocation2 + $0x60] sm:$0xff]  ;;  %v3996_v1 = vpack.c.bf16 %v890_v28, %v888_v27 }
  0xac   :  { %301 = vst.msk [vmem:[#allocation2 + $0x80] sm:$0xff] %vm283_vm0, %v282_v32  ;;  %v892_v32 = vld [vmem:[%s4499_s6 + $0x28] sm:$0xff] }
  0xad   :  { %356 = vrot.lane.b32.xlu0 %v3877_v33, %s3523_s2  ;;  %358 = vrot.lane.b32.xlu1 %v3882_v16, %s3523_s2 }
  0xae   :  { %v3886_v34 = vld [vmem:[#allocation2 + $0x68] sm:$0xff]  ;;  %3016 = vmatprep.subr.bf16.mxu1 %v3996_v1 }
  0xb0   :  { %v3890_v35 = vld [vmem:[#allocation2 + $0x70] sm:$0xff] }
  0xb1   :  { %360 = vrot.lane.b32.xlu0 %v3886_v34, %s3523_s2  ;;  %362 = vrot.lane.b32.xlu1 %v3890_v35, %s3523_s2  ;;  %v3894_v36 = vld [vmem:[#allocation2 + $0x78] sm:$0xff] }
  0xb3   :  { %v3896_v37 = vld [vmem:[#allocation2 + $0x80] sm:$0xff] }
  0xb5   :  { %364 = vrot.lane.b32.xlu0 %v3894_v36, %s3523_s2  ;;  %366 = vrot.lane.b32.xlu1 %v3896_v37, %s3523_s2 }
 0x10a   :  { %v339_v54 = vpop.permute.xlu1 %338 }
 0x10b   :  { %v337_v49 = vpop.permute.xlu0 %336  ;;  %v385_v59 = vsel %vm283_vm0, %v3801_v23, %v339_v54 }
 0x10c   :  { %v384_v53 = vsel %vm283_vm0, %v302_v47, %v337_v49  ;;  %v899_v47 = vld [vmem:[%s4499_s6 + $0x60] sm:$0xff]  ;;  %v901_v49 = vld [vmem:[%s4499_s6 + $0x70] sm:$0xff] }
 0x10d   :  { %529 = vmatmul.mubr.f32.vlgmr.msra.gmra.mrb[0].mxu0 %v384_v53 }
 0x10e   :  { %2813 = vmatprep.mubr.msk.f32.mxu0 %vm283_vm0, %v3817_v38  ;;  %2978 = vmatpush1.bf16.msra.mxu0 %v2977_v48  ;;  %v4051_v48 = vpack.c.bf16 %v902_v46, %v900_v45 }
 0x10f   :  { %2980 = vmatprep.subr.bf16.mxu0 %v2979_v50  ;;  %v341_v60 = vpop.permute.xlu0 %340  ;;  %v343_v3 = vpop.permute.xlu1 %342  ;;  %v4056_v50 = vpack.c.bf16 %v901_v49, %v899_v47 }
 0x110   :  { %v386_v63 = vsel %vm283_vm0, %v3795_v17, %v341_v60  ;;  %v387_v4 = vsel %vm283_vm0, %v3817_v38, %v343_v3 }
 0x111   :  { %534 = vmatmul.mubr.f32.gmra.mrb[2].mxu0 %v385_v59 }
 0x112   :  { %2814 = vmatprep.mubr.msk.f32.mxu0 %vm283_vm0, %v3819_v39  ;;  %2982 = vmatpush1.bf16.msra.mxu0 %v2981_v55 }
 0x113   :  { %v345_v5 = vpop.permute.xlu0 %344  ;;  %v347_v6 = vpop.permute.xlu1 %346  ;;  %2984 = vmatprep.subr.bf16.mxu0 %v3996_v1 }
 0x114   :  { %v388_v23 = vsel %vm283_vm0, %v3819_v39, %v345_v5  ;;  %v389_v17 = vsel %vm283_vm0, %v3836_v56, %v347_v6 }
 0x115   :  { %539 = vmatmul.mubr.f32.gmra.mrb[4].mxu0 %v386_v63 }
 0x116   :  { %2815 = vmatprep.mubr.msk.f32.mxu0 %vm283_vm0, %v3836_v56 }
 0x117   :  { %v349_v7 = vpop.permute.xlu0 %348  ;;  %v351_v2 = vpop.permute.xlu1 %350 }
 0x118   :  { %v390_v38 = vsel %vm283_vm0, %v3842_v0, %v349_v7  ;;  %v391_v39 = vsel %vm283_vm0, %v3852_v15, %v351_v2 }
 0x119   :  { %544 = vmatmul.mubr.f32.gmra.mrb[6].mxu0 %v387_v4 }
 0x11a   :  { %2816 = vmatprep.mubr.msk.f32.mxu0 %vm283_vm0, %v3842_v0 }
 0x11b   :  { %v353_v8 = vpop.permute.xlu0 %352  ;;  %v355_v9 = vpop.permute.xlu1 %354 }
 0x11c   :  { %v392_v56 = vsel %vm283_vm0, %v3854_v18, %v353_v8  ;;  %v393_v0 = vsel %vm283_vm0, %v3865_v29, %v355_v9 }
 0x11d   :  { %549 = vmatmul.mubr.f32.gmra.mrb[8].mxu0 %v388_v23 }
 0x11e   :  { %2817 = vmatprep.mubr.msk.f32.mxu0 %vm283_vm0, %v3852_v15 }
 0x11f   :  { %v357_v11 = vpop.permute.xlu0 %356  ;;  %v359_v13 = vpop.permute.xlu1 %358 }
 0x120   :  { %v394_v12 = vsel %vm283_vm0, %v3871_v31, %v357_v11  ;;  %v395_v14 = vsel %vm283_vm0, %v3877_v33, %v359_v13 }
 0x121   :  { %554 = vmatmul.mubr.f32.gmra.mrb[10].mxu0 %v389_v17 }
 0x122   :  { %2818 = vmatprep.mubr.msk.f32.mxu0 %vm283_vm0, %v3854_v18 }
 0x123   :  { %v361_v15 = vpop.permute.xlu0 %360  ;;  %v363_v20 = vpop.permute.xlu1 %362 }
 0x124   :  { %v396_v18 = vsel %vm283_vm0, %v3882_v16, %v361_v15  ;;  %v397_v21 = vsel %vm283_vm0, %v3886_v34, %v363_v20 }
 0x125   :  { %559 = vmatmul.mubr.f32.gmra.mrb[12].mxu0 %v390_v38 }
 0x126   :  { %2819 = vmatprep.mubr.msk.f32.mxu0 %vm283_vm0, %v3865_v29  ;;  %v887_v29 = vld [vmem:[%s4499_s6] sm:$0xff] }
 0x127   :  { %v365_v22 = vpop.permute.xlu0 %364  ;;  %v367_v25 = vpop.permute.xlu1 %366 }
 0x128   :  { %v398_v62 = vsel %vm283_vm0, %v3890_v35, %v365_v22  ;;  %v399_v26 = vsel %vm283_vm0, %v3894_v36, %v367_v25 }
 0x129   :  { %564 = vmatmul.mubr.f32.gmra.mrb[14].mxu0 %v391_v39 }
 0x12a   :  { %2820 = vmatprep.mubr.msk.f32.mxu0 %vm283_vm0, %v3871_v31  ;;  %v4001_v31 = vpack.c.bf16 %v889_v30, %v887_v29 }
 0x12c   :  { %3018 = vmatpush1.bf16.msra.mxu1 %v4001_v31 }
 0x12d   :  { %569 = vmatmul.mubr.f32.gmra.mrb[16].mxu0 %v392_v56 }
 0x12e   :  { %2821 = vmatprep.mubr.msk.f32.mxu0 %vm283_vm0, %v3877_v33  ;;  %v894_v33 = vld [vmem:[%s4499_s6 + $0x38] sm:$0xff] }
 0x131   :  { %574 = vmatmul.mubr.f32.gmra.mrb[18].mxu0 %v393_v0 }
 0x132   :  { %2822 = vmatprep.mubr.msk.f32.mxu0 %vm283_vm0, %v3882_v16  ;;  %v891_v16 = vld [vmem:[%s4499_s6 + $0x20] sm:$0xff] }
 0x135   :  { %579 = vmatmul.mubr.f32.gmra.mrb[20].mxu0 %v394_v12 }
 0x136   :  { %2823 = vmatprep.mubr.msk.f32.mxu0 %vm283_vm0, %v3886_v34  ;;  %v4015_v34 = vpack.c.bf16 %v894_v33, %v892_v32 }
 0x138   :  { %3020 = vmatprep.subr.bf16.mxu1 %v4015_v34 }
 0x139   :  { %584 = vmatmul.mubr.f32.gmra.mrb[22].mxu0 %v395_v14 }
 0x13a   :  { %2824 = vmatprep.mubr.msk.f32.mxu0 %vm283_vm0, %v3890_v35  ;;  %v893_v35 = vld [vmem:[%s4499_s6 + $0x30] sm:$0xff] }
 0x13d   :  { %589 = vmatmul.mubr.f32.gmra.mrb[24].mxu0 %v396_v18 }
 0x13e   :  { %2825 = vmatprep.mubr.msk.f32.mxu0 %vm283_vm0, %v3894_v36  ;;  %v4020_v36 = vpack.c.bf16 %v893_v35, %v891_v16 }
 0x140   :  { %3022 = vmatpush1.bf16.msra.mxu1 %v4020_v36 }
 0x141   :  { %594 = vmatmul.mubr.f32.gmra.mrb[26].mxu0 %v397_v21 }
 0x142   :  { %2826 = vmatprep.mubr.msk.f32.mxu0 %vm283_vm0, %v3896_v37  ;;  %v896_v37 = vld [vmem:[%s4499_s6 + $0x48] sm:$0xff] }
 0x143   :  { %v4033_v42 = vpack.c.bf16 %v898_v40, %v896_v37 }
 0x145   :  { %599 = vmatmul.mubr.f32.gmra.mrb[28].mxu0 %v398_v62  ;;  %3024 = vmatprep.subr.bf16.mxu1 %v4033_v42 }
 0x146   :  { %2827 = vmatprep.mubr.msk.f32.mxu0 %vm283_vm0, %v319_v24  ;;  %3026 = vmatpush1.bf16.msra.mxu1 %v4038_v44 }
 0x147   :  { %3028 = vmatprep.subr.bf16.mxu1 %v4051_v48 }
 0x149   :  { %604 = vmatmul.mubr.f32.gmra.mrb[30].mxu0 %v399_v26 }
 0x14a   :  { %758 = vmatprep.mubr.f32.mxu0 %v3522_v10  ;;  %3030 = vmatpush1.bf16.msra.mxu1 %v4056_v50 }
 0x14b   :  { %3032 = vmatprep.subr.bf16.mxu1 %v3996_v1 }
 0x1e0   :  { %v530_v52 = vpop.f32.mrb[0].mxu0 }
 0x1e1   :  { %v531_v53 = vadd.f32 %v4064_v51, %v530_v52  ;;  %v532_v54 = vpop.f32.mrb[1].mxu0 }
 0x1e3   :  { %v609_v55 = vmax.f32 %v531_v53, 0.0 }
 0x1e4   :  { %v535_v59 = vpop.f32.mrb[2].mxu0 }
 0x1e5   :  { %v536_v60 = vadd.f32 %v4064_v51, %v535_v59  ;;  %v537_v63 = vpop.f32.mrb[3].mxu0  ;;  %2828 = vmatmul.mubr.msk.f32.vlgmr.msra.gmra.mrb[32].mxu0 %vm645_vm1, %v609_v55 }
 0x1e6   :  { %2986 = vmatpush1.bf16.msra.mxu0 %v4001_v31  ;;  %764 = vmatprep.mubr.f32.mxu0 %v3522_v10 }
 0x1e7   :  { %v610_v3 = vmax.f32 %v536_v60, 0.0  ;;  %2988 = vmatprep.subr.bf16.mxu0 %v4015_v34 }
 0x1e8   :  { %v540_v4 = vpop.f32.mrb[4].mxu0 }
 0x1e9   :  { %v541_v5 = vadd.f32 %v4064_v51, %v540_v4  ;;  %v542_v23 = vpop.f32.mrb[5].mxu0  ;;  %2829 = vmatmul.mubr.msk.f32.gmra.mrb[34].mxu0 %vm645_vm1, %v610_v3 }
 0x1ea   :  { %770 = vmatprep.mubr.f32.mxu0 %v3522_v10  ;;  %2990 = vmatpush1.bf16.msra.mxu0 %v4020_v36 }
 0x1eb   :  { %v611_v6 = vmax.f32 %v541_v5, 0.0  ;;  %2992 = vmatprep.subr.bf16.mxu0 %v4033_v42 }
 0x1ec   :  { %v545_v17 = vpop.f32.mrb[6].mxu0 }
 0x1ed   :  { %v546_v7 = vadd.f32 %v4064_v51, %v545_v17  ;;  %v547_v38 = vpop.f32.mrb[7].mxu0  ;;  %2830 = vmatmul.mubr.msk.f32.gmra.mrb[36].mxu0 %vm645_vm1, %v611_v6 }
 0x1ee   :  { %776 = vmatprep.mubr.f32.mxu0 %v3522_v10  ;;  %2994 = vmatpush1.bf16.msra.mxu0 %v4038_v44 }
 0x1ef   :  { %v612_v2 = vmax.f32 %v546_v7, 0.0  ;;  %2996 = vmatprep.subr.bf16.mxu0 %v4051_v48 }
 0x1f0   :  { %v550_v39 = vpop.f32.mrb[8].mxu0 }
 0x1f1   :  { %v551_v8 = vadd.f32 %v4064_v51, %v550_v39  ;;  %v552_v56 = vpop.f32.mrb[9].mxu0  ;;  %2831 = vmatmul.mubr.msk.f32.gmra.mrb[38].mxu0 %vm645_vm1, %v612_v2 }
 0x1f2   :  { %782 = vmatprep.mubr.f32.mxu0 %v3522_v10  ;;  %2998 = vmatpush1.bf16.msra.mxu0 %v4056_v50 }
 0x1f3   :  { %v613_v9 = vmax.f32 %v551_v8, 0.0  ;;  %3000 = vmatprep.subr.bf16.mxu0 %v3996_v1 }
 0x1f4   :  { %v555_v0 = vpop.f32.mrb[10].mxu0 }
 0x1f5   :  { %v556_v11 = vadd.f32 %v4064_v51, %v555_v0  ;;  %v557_v12 = vpop.f32.mrb[11].mxu0  ;;  %2832 = vmatmul.mubr.msk.f32.gmra.mrb[40].mxu0 %vm645_vm1, %v613_v9 }
 0x1f6   :  { %788 = vmatprep.mubr.f32.mxu0 %v3522_v10 }
 0x1f7   :  { %v614_v13 = vmax.f32 %v556_v11, 0.0 }
 0x1f8   :  { %v560_v14 = vpop.f32.mrb[12].mxu0 }
 0x1f9   :  { %v561_v15 = vadd.f32 %v4064_v51, %v560_v14  ;;  %v562_v18 = vpop.f32.mrb[13].mxu0  ;;  %2833 = vmatmul.mubr.msk.f32.gmra.mrb[42].mxu0 %vm645_vm1, %v614_v13 }
 0x1fa   :  { %794 = vmatprep.mubr.f32.mxu0 %v3522_v10 }
 0x1fb   :  { %v615_v20 = vmax.f32 %v561_v15, 0.0 }
 0x1fc   :  { %v565_v21 = vpop.f32.mrb[14].mxu0 }
 0x1fd   :  { %v566_v22 = vadd.f32 %v4064_v51, %v565_v21  ;;  %v567_v24 = vpop.f32.mrb[15].mxu0  ;;  %2834 = vmatmul.mubr.msk.f32.gmra.mrb[44].mxu0 %vm645_vm1, %v615_v20 }
 0x1fe   :  { %800 = vmatprep.mubr.f32.mxu0 %v3522_v10 }
 0x1ff   :  { %v616_v62 = vmax.f32 %v566_v22, 0.0 }
 0x200   :  { %v570_v25 = vpop.f32.mrb[16].mxu0 }
 0x201   :  { %v571_v26 = vadd.f32 %v4064_v51, %v570_v25  ;;  %v572_v27 = vpop.f32.mrb[17].mxu0  ;;  %2835 = vmatmul.mubr.msk.f32.gmra.mrb[46].mxu0 %vm645_vm1, %v616_v62 }
 0x202   :  { %806 = vmatprep.mubr.f32.mxu0 %v3522_v10 }
 0x203   :  { %v617_v28 = vmax.f32 %v571_v26, 0.0 }
 0x204   :  { %v575_v29 = vpop.f32.mrb[18].mxu0 }
 0x205   :  { %v576_v30 = vadd.f32 %v4064_v51, %v575_v29  ;;  %v577_v32 = vpop.f32.mrb[19].mxu0  ;;  %2836 = vmatmul.mubr.msk.f32.gmra.mrb[48].mxu0 %vm645_vm1, %v617_v28 }
 0x206   :  { %812 = vmatprep.mubr.f32.mxu0 %v3522_v10 }
 0x207   :  { %v618_v33 = vmax.f32 %v576_v30, 0.0 }
 0x208   :  { %v580_v16 = vpop.f32.mrb[20].mxu0 }
 0x209   :  { %v581_v35 = vadd.f32 %v4064_v51, %v580_v16  ;;  %v582_v37 = vpop.f32.mrb[21].mxu0  ;;  %2837 = vmatmul.mubr.msk.f32.gmra.mrb[50].mxu0 %vm645_vm1, %v618_v33  ;;  %v633_v16 = vld [vmem:[%s4501_s7] sm:$0x3] }
 0x20a   :  { %818 = vmatprep.mubr.f32.mxu0 %v3522_v10  ;;  %v4193_v37 = vrot.slane %v633_v16, %v169_v58 }
 0x20b   :  { %v619_v40 = vmax.f32 %v581_v35, 0.0 }
 0x20c   :  { %v585_v41 = vpop.f32.mrb[22].mxu0 }
 0x20d   :  { %v586_v43 = vadd.f32 %v4064_v51, %v585_v41  ;;  %v587_v45 = vpop.f32.mrb[23].mxu0  ;;  %2838 = vmatmul.mubr.msk.f32.gmra.mrb[52].mxu0 %vm645_vm1, %v619_v40 }
 0x20e   :  { %824 = vmatprep.mubr.f32.mxu0 %v3522_v10 }
 0x20f   :  { %v620_v46 = vmax.f32 %v586_v43, 0.0 }
 0x210   :  { %v590_v47 = vpop.f32.mrb[24].mxu0 }
 0x211   :  { %v591_v49 = vadd.f32 %v4064_v51, %v590_v47  ;;  %v592_v52 = vpop.f32.mrb[25].mxu0  ;;  %2839 = vmatmul.mubr.msk.f32.gmra.mrb[54].mxu0 %vm645_vm1, %v620_v46  ;;  %v4199_v46 = vrot.slane %v633_v16, %v144_v61 }
 0x212   :  { %830 = vmatprep.mubr.f32.mxu0 %v3522_v10 }
 0x213   :  { %v621_v53 = vmax.f32 %v591_v49, 0.0 }
 0x214   :  { %v595_v54 = vpop.f32.mrb[26].mxu0 }
 0x215   :  { %v596_v55 = vadd.f32 %v4064_v51, %v595_v54  ;;  %v597_v59 = vpop.f32.mrb[27].mxu0  ;;  %2840 = vmatmul.mubr.msk.f32.gmra.mrb[56].mxu0 %vm645_vm1, %v621_v53 }
 0x216   :  { %836 = vmatprep.mubr.f32.mxu0 %v3522_v10 }
 0x217   :  { %v622_v60 = vmax.f32 %v596_v55, 0.0 }
 0x218   :  { %v600_v63 = vpop.f32.mrb[28].mxu0 }
 0x219   :  { %v601_v3 = vadd.f32 %v4064_v51, %v600_v63  ;;  %v602_v4 = vpop.f32.mrb[29].mxu0  ;;  %2841 = vmatmul.mubr.msk.f32.gmra.mrb[58].mxu0 %vm645_vm1, %v622_v60 }
 0x21a   :  { %842 = vmatprep.mubr.f32.mxu0 %v3522_v10 }
 0x21b   :  { %v623_v5 = vmax.f32 %v601_v3, 0.0 }
 0x21c   :  { %v605_v23 = vpop.f32.mrb[30].mxu0 }
 0x21d   :  { %v606_v6 = vadd.f32 %v4064_v51, %v605_v23  ;;  %v607_v17 = vpop.f32.mrb[31].mxu0  ;;  %2842 = vmatmul.mubr.msk.f32.gmra.mrb[60].mxu0 %vm645_vm1, %v623_v5 }
 0x21e   :  { %848 = vmatprep.mubr.f32.mxu0 %v3522_v10 }
 0x21f   :  { %v624_v7 = vmax.f32 %v606_v6, 0.0 }
 0x221   :  { %2843 = vmatmul.mubr.msk.f32.gmra.mrb[62].mxu0 %vm645_vm1, %v624_v7 }
 0x222   :  { %972 = vmatprep.mubr.f32.mxu0 %v3522_v10 }
 0x225   :  { %973 = vmatmul.mubr.f32.vlgmr.msra.gmra.mrb[32].mxu0 %v3522_v10 }
 0x226   :  { %3002 = vmatpush1.bf16.msra.mxu0 %v4001_v31  ;;  %1080 = vmatprep.mubr.f32.mxu0 %v3522_v10 }
 0x227   :  { %3004 = vmatprep.subr.bf16.mxu0 %v4015_v34 }
 0x22a   :  { %3006 = vmatpush1.bf16.msra.mxu0 %v4020_v36 }
 0x22b   :  { %3008 = vmatprep.subr.bf16.mxu0 %v4033_v42 }
 0x22e   :  { %3010 = vmatpush1.bf16.msra.mxu0 %v4038_v44 }
 0x22f   :  { %3012 = vmatprep.subr.bf16.mxu0 %v4051_v48 }
 0x232   :  { %3014 = vmatpush1.bf16.msra.mxu0 %v4056_v50 }
 0x233   :  { %3239 = vmatprep.subr.bf16.mxu0 %v3521_v19 }
 0x2c0   :  { %v4132_v51 = vpop.f32.mrb[36].mxu0 }
 0x2c1   :  { %v4134_v38 = vpop.f32.mrb[37].mxu0 }
 0x2c4   :  { %v4136_v2 = vpop.f32.mrb[38].mxu0 }
 0x2c5   :  { %v4138_v39 = vpop.f32.mrb[39].mxu0 }
 0x2c8   :  { %v4140_v8 = vpop.f32.mrb[40].mxu0 }
 0x2c9   :  { %v4142_v56 = vpop.f32.mrb[41].mxu0 }
 0x2cc   :  { %v4144_v9 = vpop.f32.mrb[42].mxu0 }
 0x2cd   :  { %v4146_v0 = vpop.f32.mrb[43].mxu0 }
 0x2d0   :  { %v4148_v11 = vpop.f32.mrb[44].mxu0 }
 0x2d1   :  { %v4150_v12 = vpop.f32.mrb[45].mxu0 }
 0x2d4   :  { %v4152_v13 = vpop.f32.mrb[46].mxu0 }
 0x2d5   :  { %v4154_v14 = vpop.f32.mrb[47].mxu0 }
 0x2d8   :  { %v4156_v15 = vpop.f32.mrb[48].mxu0 }
 0x2d9   :  { %v4158_v18 = vpop.f32.mrb[49].mxu0 }
 0x2dc   :  { %v4160_v20 = vpop.f32.mrb[50].mxu0 }
 0x2dd   :  { %v4162_v21 = vpop.f32.mrb[51].mxu0 }
 0x2e0   :  { %v4164_v22 = vpop.f32.mrb[52].mxu0 }
 0x2e1   :  { %v4166_v24 = vpop.f32.mrb[53].mxu0 }
 0x2e4   :  { %v4168_v62 = vpop.f32.mrb[54].mxu0 }
 0x2e5   :  { %v4170_v25 = vpop.f32.mrb[55].mxu0 }
 0x2e8   :  { %v4172_v26 = vpop.f32.mrb[56].mxu0 }
 0x2e9   :  { %v4174_v27 = vpop.f32.mrb[57].mxu0 }
 0x2ec   :  { %v4176_v28 = vpop.f32.mrb[58].mxu0 }
 0x2ed   :  { %v4178_v29 = vpop.f32.mrb[59].mxu0 }
 0x2f0   :  { %v4180_v30 = vpop.f32.mrb[60].mxu0 }
 0x2f1   :  { %v4182_v32 = vpop.f32.mrb[61].mxu0 }
 0x2f4   :  { %v4184_v33 = vpop.f32.mrb[62].mxu0 }
 0x2f5   :  { %v4189_v35 = vpop.f32.mrb[63].mxu0 }
 0x2f8   :  { %v974_v40 = vpop.f32.mrb[32].mxu0 }
 0x2f9   :  { %v976_v41 = vpop.f32.mrb[33].mxu0  ;;  %v3257_v47 = vadd.f32 %v974_v40, %v4199_v46 }
 0x2fa   :  { %v3258_v43 = vadd.f32 %v976_v41, %v4193_v37 }
 0x2fb   :  { %v2844_v49 = vmul.f32 -1.442695, %v3257_v47 }
 0x2fc   :  { %3328 = vtanh.f32 %v3258_v43  ;;  %v2845_v57 = vmul.f32 -1.442695, %v3258_v43 }
 0x2fd   :  { %3330 = vpow2.f32 %v2844_v49 }
 0x306   :  { %v3329_v45 = vpop.eup %3328 }
 0x307   :  { %996 = vrot.lane.b32.xlu0 %v3329_v45, %s3523_s2  ;;  %v3331_v52 = vpop.eup %3330 }
 0x308   :  { %v987_v53 = vadd.f32 1.0, %v3331_v52 }
 0x30a   :  { %3332 = vrcp.f32 %v987_v53 }
 0x314   :  { %v3333_v58 = vpop.eup %3332 }
 0x315   :  { %v994_v59 = vmul.f32 0.0, %v3333_v58 }
 0x379   :  { %v997_v54 = vpop.permute.xlu0 %996 }
 0x37a   :  { %v999_v55 = vmul.f32 %v3333_v58, %v997_v54 }
 0x37c   :  { %1001 = vrot.lane.b32.xlu1 %v999_v55, %s3523_s2 }
 0x3ee   :  { %v1002_v60 = vpop.permute.xlu1 %1001 }
 0x3ef   :  { %v1004_v63 = vadd.f32 %v1002_v60, %v994_v59 }
 0x3f1   :  { %3334 = vtanh.f32 %v1004_v63 }
 0x3f2   :  { %3336 = vpow2.f32 %v2845_v57 }
 0x3fb   :  { %v3335_v3 = vpop.eup %3334 }
 0x3fc   :  { %1007 = vrot.lane.b32.xlu0 %v3335_v3, %s3523_s2  ;;  %v3337_v61 = vpop.eup %3336 }
 0x3fd   :  { %v988_v4 = vadd.f32 1.0, %v3337_v61 }
 0x3ff   :  { %3338 = vrcp.f32 %v988_v4 }
 0x409   :  { %v3339_v5 = vpop.eup %3338 }
 0x46e   :  { %v1008_v23 = vpop.permute.xlu0 %1007 }
 0x46f   :  { %v1010_v6 = vmul.f32 %v3339_v5, %v1008_v23  ;;  %v775_v23 = vadd.f32 %v4134_v38, %v4193_v37 }
 0x471   :  { %2846 = vmatmul.mubr.msk.f32.vlgmr.msra.gmra.mrb[34].mxu0 %vm283_vm0, %v1010_v6 }
 0x472   :  { %2925 = vmatprep.mubr.msk.f32.mxu0 %vm3524_vm2, %v3522_v10 }
 0x544   :  { %v1082_v17 = vpop.f32.mrb[34].mxu0 }
 0x545   :  { %v1084_v7 = vpop.f32.mrb[35].mxu0  ;;  %v3259_v41 = vadd.f32 %v1082_v17, %v4199_v46 }
 0x546   :  { %v3260_v16 = vadd.f32 %v1084_v7, %v4193_v37 }
 0x547   :  { %v2847_v43 = vmul.f32 -1.442695, %v3259_v41 }
 0x548   :  { %3340 = vtanh.f32 %v3260_v16  ;;  %v2848_v60 = vmul.f32 -1.442695, %v3260_v16 }
 0x549   :  { %3342 = vpow2.f32 %v2847_v43 }
 0x552   :  { %v3341_v40 = vpop.eup %3340 }
 0x553   :  { %1104 = vrot.lane.b32.xlu1 %v3341_v40, %s3523_s2  ;;  %v3343_v45 = vpop.eup %3342 }
 0x554   :  { %v1095_v47 = vadd.f32 1.0, %v3343_v45 }
 0x556   :  { %3344 = vrcp.f32 %v1095_v47 }
 0x560   :  { %v3345_v49 = vpop.eup %3344 }
 0x561   :  { %v1102_v58 = vmul.f32 %v3345_v49, %v1004_v63  ;;  %v773_v63 = vadd.f32 %v4132_v51, %v4199_v46 }
 0x5c5   :  { %v1105_v52 = vpop.permute.xlu1 %1104 }
 0x5c6   :  { %v1107_v53 = vmul.f32 %v3345_v49, %v1105_v52 }
 0x5c8   :  { %1109 = vrot.lane.b32.xlu0 %v1107_v53, %s3523_s2 }
 0x63a   :  { %v1110_v54 = vpop.permute.xlu0 %1109 }
 0x63b   :  { %v1112_v55 = vadd.f32 %v1110_v54, %v1102_v58 }
 0x63d   :  { %3346 = vtanh.f32 %v1112_v55 }
 0x63e   :  { %3348 = vpow2.f32 %v2848_v60 }
 0x647   :  { %v3347_v59 = vpop.eup %3346 }
 0x648   :  { %1115 = vrot.lane.b32.xlu1 %v3347_v59, %s3523_s2  ;;  %v3349_v3 = vpop.eup %3348 }
 0x649   :  { %v1096_v57 = vadd.f32 1.0, %v3349_v3 }
 0x64b   :  { %3350 = vrcp.f32 %v1096_v57 }
 0x655   :  { %v3351_v61 = vpop.eup %3350 }
 0x6ba   :  { %v1116_v4 = vpop.permute.xlu1 %1115 }
 0x6bb   :  { %v1118_v5 = vmul.f32 %v3351_v61, %v1116_v4  ;;  %v781_v4 = vadd.f32 %v4138_v39, %v4193_v37 }
 0x6bd   :  { %2849 = vmatmul.mubr.msk.f32.vlgmr.msra.gmra.mrb[0].mxu1 %vm283_vm0, %v1118_v5 }
 0x6be   :  { %3034 = vmatpush1.bf16.msra.mxu1 %v4001_v31  ;;  %1296 = vmatprep.mubr.f32.mxu1 %v3522_v10 }
 0x6bf   :  { %3036 = vmatprep.subr.bf16.mxu1 %v4015_v34 }
 0x6c2   :  { %3038 = vmatpush1.bf16.msra.mxu1 %v4020_v36 }
 0x6c3   :  { %3040 = vmatprep.subr.bf16.mxu1 %v4033_v42 }
 0x6c6   :  { %3042 = vmatpush1.bf16.msra.mxu1 %v4038_v44 }
 0x6c7   :  { %3044 = vmatprep.subr.bf16.mxu1 %v4051_v48 }
 0x6ca   :  { %3046 = vmatpush1.bf16.msra.mxu1 %v4056_v50 }
 0x6cb   :  { %3048 = vmatprep.subr.bf16.mxu1 %v3996_v1 }
 0x790   :  { %v1190_v6 = vpop.f32.mrb[0].mxu1 }
 0x791   :  { %v1195_v17 = vadd.f32 %v1190_v6, %v773_v63  ;;  %v1192_v7 = vpop.f32.mrb[1].mxu1 }
 0x792   :  { %v1196_v16 = vadd.f32 %v1192_v7, %v775_v23 }
 0x793   :  { %v2850_v41 = vmul.f32 -1.442695, %v1195_v17 }
 0x794   :  { %3352 = vtanh.f32 %v1196_v16  ;;  %v2851_v54 = vmul.f32 -1.442695, %v1196_v16 }
 0x795   :  { %3354 = vpow2.f32 %v2850_v41 }
 0x79e   :  { %v3353_v40 = vpop.eup %3352 }
 0x79f   :  { %1212 = vrot.lane.b32.xlu0 %v3353_v40, %s3523_s2  ;;  %v3355_v43 = vpop.eup %3354 }
 0x7a0   :  { %v1203_v45 = vadd.f32 1.0, %v3355_v43 }
 0x7a2   :  { %3356 = vrcp.f32 %v1203_v45 }
 0x7ac   :  { %v3357_v47 = vpop.eup %3356 }
 0x7ad   :  { %v1210_v51 = vmul.f32 %v3357_v47, %v1112_v55  ;;  %v779_v55 = vadd.f32 %v4136_v2, %v4199_v46 }
 0x811   :  { %v1213_v49 = vpop.permute.xlu0 %1212 }
 0x812   :  { %v1215_v52 = vmul.f32 %v3357_v47, %v1213_v49 }
 0x814   :  { %1217 = vrot.lane.b32.xlu1 %v1215_v52, %s3523_s2 }
 0x886   :  { %v1218_v38 = vpop.permute.xlu1 %1217 }
 0x887   :  { %v1220_v53 = vadd.f32 %v1218_v38, %v1210_v51 }
 0x889   :  { %3358 = vtanh.f32 %v1220_v53 }
 0x88a   :  { %3360 = vpow2.f32 %v2851_v54 }
 0x893   :  { %v3359_v58 = vpop.eup %3358 }
 0x894   :  { %1223 = vrot.lane.b32.xlu0 %v3359_v58, %s3523_s2  ;;  %v3361_v59 = vpop.eup %3360 }
 0x895   :  { %v1204_v60 = vadd.f32 1.0, %v3361_v59 }
 0x897   :  { %3362 = vrcp.f32 %v1204_v60  ;;  %v787_v60 = vadd.f32 %v4142_v56, %v4193_v37 }
 0x8a1   :  { %v3363_v3 = vpop.eup %3362 }
 0x906   :  { %v1224_v57 = vpop.permute.xlu0 %1223 }
 0x907   :  { %v1226_v61 = vmul.f32 %v3363_v3, %v1224_v57 }
 0x909   :  { %2852 = vmatmul.mubr.msk.f32.vlgmr.msra.gmra.mrb[2].mxu1 %vm283_vm0, %v1226_v61 }
 0x90a   :  { %3050 = vmatpush1.bf16.msra.mxu1 %v4001_v31  ;;  %1404 = vmatprep.mubr.f32.mxu1 %v3522_v10 }
 0x90b   :  { %3052 = vmatprep.subr.bf16.mxu1 %v4015_v34 }
 0x90e   :  { %3054 = vmatpush1.bf16.msra.mxu1 %v4020_v36 }
 0x90f   :  { %3056 = vmatprep.subr.bf16.mxu1 %v4033_v42 }
 0x912   :  { %3058 = vmatpush1.bf16.msra.mxu1 %v4038_v44 }
 0x913   :  { %3060 = vmatprep.subr.bf16.mxu1 %v4051_v48 }
 0x916   :  { %3062 = vmatpush1.bf16.msra.mxu1 %v4056_v50 }
 0x917   :  { %3064 = vmatprep.subr.bf16.mxu1 %v3996_v1 }
 0x9dc   :  { %v1298_v5 = vpop.f32.mrb[2].mxu1 }
 0x9dd   :  { %v1303_v63 = vadd.f32 %v1298_v5, %v779_v55  ;;  %v1300_v23 = vpop.f32.mrb[3].mxu1 }
 0x9de   :  { %v1304_v6 = vadd.f32 %v1300_v23, %v781_v4 }
 0x9df   :  { %v2853_v7 = vmul.f32 -1.442695, %v1303_v63 }
 0x9e0   :  { %3364 = vtanh.f32 %v1304_v6  ;;  %v2854_v52 = vmul.f32 -1.442695, %v1304_v6 }
 0x9e1   :  { %3366 = vpow2.f32 %v2853_v7 }
 0x9ea   :  { %v3365_v17 = vpop.eup %3364 }
 0x9eb   :  { %1320 = vrot.lane.b32.xlu1 %v3365_v17, %s3523_s2  ;;  %v3367_v16 = vpop.eup %3366 }
 0x9ec   :  { %v1311_v40 = vadd.f32 1.0, %v3367_v16 }
 0x9ee   :  { %3368 = vrcp.f32 %v1311_v40 }
 0x9f8   :  { %v3369_v41 = vpop.eup %3368 }
 0x9f9   :  { %v1318_v2 = vmul.f32 %v3369_v41, %v1220_v53  ;;  %v785_v53 = vadd.f32 %v4140_v8, %v4199_v46 }
 0xa5d   :  { %v1321_v43 = vpop.permute.xlu1 %1320 }
 0xa5e   :  { %v1323_v45 = vmul.f32 %v3369_v41, %v1321_v43 }
 0xa60   :  { %1325 = vrot.lane.b32.xlu0 %v1323_v45, %s3523_s2 }
 0xad2   :  { %v1326_v39 = vpop.permute.xlu0 %1325 }
 0xad3   :  { %v1328_v47 = vadd.f32 %v1326_v39, %v1318_v2 }
 0xad5   :  { %3370 = vtanh.f32 %v1328_v47 }
 0xad6   :  { %3372 = vpow2.f32 %v2854_v52  ;;  %v793_v52 = vadd.f32 %v4146_v0, %v4193_v37 }
 0xadf   :  { %v3371_v49 = vpop.eup %3370 }
 0xae0   :  { %1331 = vrot.lane.b32.xlu1 %v3371_v49, %s3523_s2  ;;  %v3373_v51 = vpop.eup %3372 }
 0xae1   :  { %v1312_v38 = vadd.f32 1.0, %v3373_v51 }
 0xae3   :  { %3374 = vrcp.f32 %v1312_v38 }
 0xaed   :  { %v3375_v58 = vpop.eup %3374 }
 0xb52   :  { %v1332_v54 = vpop.permute.xlu1 %1331 }
 0xb53   :  { %v1334_v59 = vmul.f32 %v3375_v58, %v1332_v54 }
 0xb55   :  { %2855 = vmatmul.mubr.msk.f32.vlgmr.msra.gmra.mrb[4].mxu1 %vm283_vm0, %v1334_v59 }
 0xb56   :  { %3066 = vmatpush1.bf16.msra.mxu1 %v4001_v31  ;;  %1512 = vmatprep.mubr.f32.mxu1 %v3522_v10 }
 0xb57   :  { %3068 = vmatprep.subr.bf16.mxu1 %v4015_v34 }
 0xb5a   :  { %3070 = vmatpush1.bf16.msra.mxu1 %v4020_v36 }
 0xb5b   :  { %3072 = vmatprep.subr.bf16.mxu1 %v4033_v42 }
 0xb5e   :  { %3074 = vmatpush1.bf16.msra.mxu1 %v4038_v44 }
 0xb5f   :  { %3076 = vmatprep.subr.bf16.mxu1 %v4051_v48 }
 0xb62   :  { %3078 = vmatpush1.bf16.msra.mxu1 %v4056_v50 }
 0xb63   :  { %3080 = vmatprep.subr.bf16.mxu1 %v3996_v1 }
 0xc28   :  { %v1406_v3 = vpop.f32.mrb[4].mxu1 }
 0xc29   :  { %v1411_v57 = vadd.f32 %v1406_v3, %v785_v53  ;;  %v1408_v61 = vpop.f32.mrb[5].mxu1 }
 0xc2a   :  { %v1412_v55 = vadd.f32 %v1408_v61, %v787_v60 }
 0xc2b   :  { %v2856_v5 = vmul.f32 -1.442695, %v1411_v57 }
 0xc2c   :  { %3376 = vtanh.f32 %v1412_v55  ;;  %v2857_v41 = vmul.f32 -1.442695, %v1412_v55 }
 0xc2d   :  { %3378 = vpow2.f32 %v2856_v5 }
 0xc36   :  { %v3377_v4 = vpop.eup %3376 }
 0xc37   :  { %1428 = vrot.lane.b32.xlu0 %v3377_v4, %s3523_s2  ;;  %v3379_v63 = vpop.eup %3378 }
 0xc38   :  { %v1419_v23 = vadd.f32 1.0, %v3379_v63 }
 0xc3a   :  { %3380 = vrcp.f32 %v1419_v23 }
 0xc44   :  { %v3381_v6 = vpop.eup %3380 }
 0xc45   :  { %v1426_v8 = vmul.f32 %v3381_v6, %v1328_v47  ;;  %v791_v47 = vadd.f32 %v4144_v9, %v4199_v46 }
 0xca9   :  { %v1429_v17 = vpop.permute.xlu0 %1428 }
 0xcaa   :  { %v1431_v7 = vmul.f32 %v3381_v6, %v1429_v17 }
 0xcac   :  { %1433 = vrot.lane.b32.xlu1 %v1431_v7, %s3523_s2 }
 0xd1e   :  { %v1434_v56 = vpop.permute.xlu1 %1433 }
 0xd1f   :  { %v1436_v16 = vadd.f32 %v1434_v56, %v1426_v8  ;;  %v797_v56 = vadd.f32 %v4148_v11, %v4199_v46 }
 0xd21   :  { %3382 = vtanh.f32 %v1436_v16 }
 0xd22   :  { %3384 = vpow2.f32 %v2857_v41 }
 0xd2b   :  { %v3383_v40 = vpop.eup %3382 }
 0xd2c   :  { %1439 = vrot.lane.b32.xlu0 %v3383_v40, %s3523_s2  ;;  %v3385_v43 = vpop.eup %3384 }
 0xd2d   :  { %v1420_v45 = vadd.f32 1.0, %v3385_v43 }
 0xd2f   :  { %3386 = vrcp.f32 %v1420_v45 }
 0xd39   :  { %v3387_v2 = vpop.eup %3386 }
 0xd9e   :  { %v1440_v39 = vpop.permute.xlu0 %1439 }
 0xd9f   :  { %v1442_v49 = vmul.f32 %v3387_v2, %v1440_v39 }
 0xda1   :  { %2858 = vmatmul.mubr.msk.f32.vlgmr.msra.gmra.mrb[6].mxu1 %vm283_vm0, %v1442_v49 }
 0xda2   :  { %3082 = vmatpush1.bf16.msra.mxu1 %v4001_v31  ;;  %1620 = vmatprep.mubr.f32.mxu1 %v3522_v10 }
 0xda3   :  { %3084 = vmatprep.subr.bf16.mxu1 %v4015_v34 }
 0xda6   :  { %3086 = vmatpush1.bf16.msra.mxu1 %v4020_v36 }
 0xda7   :  { %3088 = vmatprep.subr.bf16.mxu1 %v4033_v42 }
 0xdaa   :  { %3090 = vmatpush1.bf16.msra.mxu1 %v4038_v44 }
 0xdab   :  { %3092 = vmatprep.subr.bf16.mxu1 %v4051_v48 }
 0xdae   :  { %3094 = vmatpush1.bf16.msra.mxu1 %v4056_v50 }
 0xdaf   :  { %3096 = vmatprep.subr.bf16.mxu1 %v3996_v1 }
 0xe74   :  { %v1514_v51 = vpop.f32.mrb[6].mxu1 }
 0xe75   :  { %v1519_v38 = vadd.f32 %v1514_v51, %v791_v47  ;;  %v1516_v58 = vpop.f32.mrb[7].mxu1 }
 0xe76   :  { %v1520_v54 = vadd.f32 %v1516_v58, %v793_v52 }
 0xe77   :  { %v2859_v53 = vmul.f32 -1.442695, %v1519_v38 }
 0xe78   :  { %3388 = vtanh.f32 %v1520_v54  ;;  %v2860_v63 = vmul.f32 -1.442695, %v1520_v54 }
 0xe79   :  { %3390 = vpow2.f32 %v2859_v53 }
 0xe82   :  { %v3389_v59 = vpop.eup %3388 }
 0xe83   :  { %1536 = vrot.lane.b32.xlu1 %v3389_v59, %s3523_s2  ;;  %v3391_v60 = vpop.eup %3390 }
 0xe84   :  { %v1527_v3 = vadd.f32 1.0, %v3391_v60 }
 0xe86   :  { %3392 = vrcp.f32 %v1527_v3 }
 0xe90   :  { %v3393_v57 = vpop.eup %3392 }
 0xe91   :  { %v1534_v9 = vmul.f32 %v3393_v57, %v1436_v16  ;;  %v799_v16 = vadd.f32 %v4150_v12, %v4193_v37 }
 0xef5   :  { %v1537_v61 = vpop.permute.xlu1 %1536 }
 0xef6   :  { %v1539_v55 = vmul.f32 %v3393_v57, %v1537_v61 }
 0xef8   :  { %1541 = vrot.lane.b32.xlu0 %v1539_v55, %s3523_s2  ;;  %v803_v55 = vadd.f32 %v4152_v13, %v4199_v46 }
 0xf6a   :  { %v1542_v0 = vpop.permute.xlu0 %1541 }
 0xf6b   :  { %v1544_v4 = vadd.f32 %v1542_v0, %v1534_v9  ;;  %v805_v9 = vadd.f32 %v4154_v14, %v4193_v37 }
 0xf6d   :  { %3394 = vtanh.f32 %v1544_v4 }
 0xf6e   :  { %3396 = vpow2.f32 %v2860_v63 }
 0xf77   :  { %v3395_v5 = vpop.eup %3394 }
 0xf78   :  { %1547 = vrot.lane.b32.xlu1 %v3395_v5, %s3523_s2  ;;  %v3397_v23 = vpop.eup %3396 }
 0xf79   :  { %v1528_v6 = vadd.f32 1.0, %v3397_v23 }
 0xf7b   :  { %3398 = vrcp.f32 %v1528_v6 }
 0xf85   :  { %v3399_v17 = vpop.eup %3398 }
 0xfea   :  { %v1548_v7 = vpop.permute.xlu1 %1547 }
 0xfeb   :  { %v1550_v8 = vmul.f32 %v3399_v17, %v1548_v7 }
 0xfed   :  { %2861 = vmatmul.mubr.msk.f32.vlgmr.msra.gmra.mrb[8].mxu1 %vm283_vm0, %v1550_v8 }
 0xfee   :  { %3098 = vmatpush1.bf16.msra.mxu1 %v4001_v31  ;;  %1728 = vmatprep.mubr.f32.mxu1 %v3522_v10 }
 0xfef   :  { %3100 = vmatprep.subr.bf16.mxu1 %v4015_v34 }
 0xff2   :  { %3102 = vmatpush1.bf16.msra.mxu1 %v4020_v36 }
 0xff3   :  { %3104 = vmatprep.subr.bf16.mxu1 %v4033_v42 }
 0xff6   :  { %3106 = vmatpush1.bf16.msra.mxu1 %v4038_v44 }
 0xff7   :  { %3108 = vmatprep.subr.bf16.mxu1 %v4051_v48 }
 0xffa   :  { %3110 = vmatpush1.bf16.msra.mxu1 %v4056_v50 }
 0xffb   :  { %3112 = vmatprep.subr.bf16.mxu1 %v3996_v1 }
0x10c0   :  { %v1622_v40 = vpop.f32.mrb[8].mxu1 }
0x10c1   :  { %v1627_v41 = vadd.f32 %v1622_v40, %v797_v56  ;;  %v1624_v43 = vpop.f32.mrb[9].mxu1 }
0x10c2   :  { %v1628_v45 = vadd.f32 %v1624_v43, %v799_v16 }
0x10c3   :  { %v2862_v39 = vmul.f32 -1.442695, %v1627_v41 }
0x10c4   :  { %3400 = vtanh.f32 %v1628_v45  ;;  %v2863_v59 = vmul.f32 -1.442695, %v1628_v45 }
0x10c5   :  { %3402 = vpow2.f32 %v2862_v39 }
0x10ce   :  { %v3401_v2 = vpop.eup %3400 }
0x10cf   :  { %1644 = vrot.lane.b32.xlu0 %v3401_v2, %s3523_s2  ;;  %v3403_v49 = vpop.eup %3402 }
0x10d0   :  { %v1635_v47 = vadd.f32 1.0, %v3403_v49 }
0x10d2   :  { %3404 = vrcp.f32 %v1635_v47 }
0x10dc   :  { %v3405_v52 = vpop.eup %3404 }
0x10dd   :  { %v1642_v11 = vmul.f32 %v3405_v52, %v1544_v4 }
0x1141   :  { %v1645_v51 = vpop.permute.xlu0 %1644 }
0x1142   :  { %v1647_v38 = vmul.f32 %v3405_v52, %v1645_v51  ;;  %v809_v52 = vadd.f32 %v4156_v15, %v4199_v46  ;;  %v811_v51 = vadd.f32 %v4158_v18, %v4193_v37 }
0x1144   :  { %1649 = vrot.lane.b32.xlu1 %v1647_v38, %s3523_s2 }
0x11b6   :  { %v1650_v12 = vpop.permute.xlu1 %1649 }
0x11b7   :  { %v1652_v58 = vadd.f32 %v1650_v12, %v1642_v11 }
0x11b9   :  { %3406 = vtanh.f32 %v1652_v58 }
0x11ba   :  { %3408 = vpow2.f32 %v2863_v59 }
0x11c3   :  { %v3407_v54 = vpop.eup %3406 }
0x11c4   :  { %1655 = vrot.lane.b32.xlu0 %v3407_v54, %s3523_s2  ;;  %v3409_v53 = vpop.eup %3408 }
0x11c5   :  { %v1636_v60 = vadd.f32 1.0, %v3409_v53 }
0x11c7   :  { %3410 = vrcp.f32 %v1636_v60 }
0x11d1   :  { %v3411_v3 = vpop.eup %3410 }
0x1236   :  { %v1656_v57 = vpop.permute.xlu0 %1655 }
0x1237   :  { %v1658_v61 = vmul.f32 %v3411_v3, %v1656_v57 }
0x1239   :  { %2864 = vmatmul.mubr.msk.f32.vlgmr.msra.gmra.mrb[10].mxu1 %vm283_vm0, %v1658_v61 }
0x123a   :  { %3114 = vmatpush1.bf16.msra.mxu1 %v4001_v31  ;;  %1836 = vmatprep.mubr.f32.mxu1 %v3522_v10 }
0x123b   :  { %3116 = vmatprep.subr.bf16.mxu1 %v4015_v34 }
0x123e   :  { %3118 = vmatpush1.bf16.msra.mxu1 %v4020_v36 }
0x123f   :  { %3120 = vmatprep.subr.bf16.mxu1 %v4033_v42 }
0x1242   :  { %3122 = vmatpush1.bf16.msra.mxu1 %v4038_v44 }
0x1243   :  { %3124 = vmatprep.subr.bf16.mxu1 %v4051_v48 }
0x1246   :  { %3126 = vmatpush1.bf16.msra.mxu1 %v4056_v50 }
0x1247   :  { %3128 = vmatprep.subr.bf16.mxu1 %v3996_v1 }
0x130c   :  { %v1730_v0 = vpop.f32.mrb[10].mxu1 }
0x130d   :  { %v1735_v4 = vadd.f32 %v1730_v0, %v803_v55  ;;  %v1732_v5 = vpop.f32.mrb[11].mxu1 }
0x130e   :  { %v1736_v63 = vadd.f32 %v1732_v5, %v805_v9 }
0x130f   :  { %v2865_v6 = vmul.f32 -1.442695, %v1735_v4 }
0x1310   :  { %3412 = vtanh.f32 %v1736_v63  ;;  %v2866_v43 = vmul.f32 -1.442695, %v1736_v63 }
0x1311   :  { %3414 = vpow2.f32 %v2865_v6 }
0x131a   :  { %v3413_v23 = vpop.eup %3412 }
0x131b   :  { %1752 = vrot.lane.b32.xlu1 %v3413_v23, %s3523_s2  ;;  %v3415_v17 = vpop.eup %3414 }
0x131c   :  { %v1743_v7 = vadd.f32 1.0, %v3415_v17  ;;  %v815_v17 = vadd.f32 %v4160_v20, %v4199_v46 }
0x131e   :  { %3416 = vrcp.f32 %v1743_v7  ;;  %v817_v7 = vadd.f32 %v4162_v21, %v4193_v37 }
0x1328   :  { %v3417_v8 = vpop.eup %3416 }
0x1329   :  { %v1750_v13 = vmul.f32 %v3417_v8, %v1652_v58 }
0x138d   :  { %v1753_v56 = vpop.permute.xlu1 %1752 }
0x138e   :  { %v1755_v16 = vmul.f32 %v3417_v8, %v1753_v56 }
0x1390   :  { %1757 = vrot.lane.b32.xlu0 %v1755_v16, %s3523_s2 }
0x1402   :  { %v1758_v14 = vpop.permute.xlu0 %1757 }
0x1403   :  { %v1760_v40 = vadd.f32 %v1758_v14, %v1750_v13 }
0x1405   :  { %3418 = vtanh.f32 %v1760_v40 }
0x1406   :  { %3420 = vpow2.f32 %v2866_v43 }
0x140f   :  { %v3419_v41 = vpop.eup %3418 }
0x1410   :  { %1763 = vrot.lane.b32.xlu1 %v3419_v41, %s3523_s2  ;;  %v3421_v45 = vpop.eup %3420 }
0x1411   :  { %v1744_v2 = vadd.f32 1.0, %v3421_v45 }
0x1413   :  { %3422 = vrcp.f32 %v1744_v2 }
0x141d   :  { %v3423_v39 = vpop.eup %3422 }
0x1482   :  { %v1764_v49 = vpop.permute.xlu1 %1763 }
0x1483   :  { %v1766_v47 = vmul.f32 %v3423_v39, %v1764_v49 }
0x1485   :  { %2867 = vmatmul.mubr.msk.f32.vlgmr.msra.gmra.mrb[12].mxu1 %vm283_vm0, %v1766_v47 }
0x1486   :  { %3130 = vmatpush1.bf16.msra.mxu1 %v4001_v31  ;;  %1944 = vmatprep.mubr.f32.mxu1 %v3522_v10 }
0x1487   :  { %3132 = vmatprep.subr.bf16.mxu1 %v4015_v34 }
0x148a   :  { %3134 = vmatpush1.bf16.msra.mxu1 %v4020_v36 }
0x148b   :  { %3136 = vmatprep.subr.bf16.mxu1 %v4033_v42 }
0x148e   :  { %3138 = vmatpush1.bf16.msra.mxu1 %v4038_v44 }
0x148f   :  { %3140 = vmatprep.subr.bf16.mxu1 %v4051_v48 }
0x1492   :  { %3142 = vmatpush1.bf16.msra.mxu1 %v4056_v50 }
0x1493   :  { %3144 = vmatprep.subr.bf16.mxu1 %v3996_v1 }
0x1558   :  { %v1838_v38 = vpop.f32.mrb[12].mxu1 }
0x1559   :  { %v1843_v11 = vadd.f32 %v1838_v38, %v809_v52  ;;  %v1840_v12 = vpop.f32.mrb[13].mxu1 }
0x155a   :  { %v1844_v58 = vadd.f32 %v1840_v12, %v811_v51 }
0x155b   :  { %v2868_v59 = vmul.f32 -1.442695, %v1843_v11 }
0x155c   :  { %3424 = vtanh.f32 %v1844_v58  ;;  %v2869_v0 = vmul.f32 -1.442695, %v1844_v58 }
0x155d   :  { %3426 = vpow2.f32 %v2868_v59  ;;  %v823_v59 = vadd.f32 %v4166_v24, %v4193_v37 }
0x1566   :  { %v3425_v54 = vpop.eup %3424 }
0x1567   :  { %1860 = vrot.lane.b32.xlu0 %v3425_v54, %s3523_s2  ;;  %v3427_v53 = vpop.eup %3426  ;;  %v821_v54 = vadd.f32 %v4164_v22, %v4199_v46 }
0x1568   :  { %v1851_v60 = vadd.f32 1.0, %v3427_v53 }
0x156a   :  { %3428 = vrcp.f32 %v1851_v60 }
0x1574   :  { %v3429_v3 = vpop.eup %3428 }
0x1575   :  { %v1858_v15 = vmul.f32 %v3429_v3, %v1760_v40 }
0x15d9   :  { %v1861_v57 = vpop.permute.xlu0 %1860 }
0x15da   :  { %v1863_v61 = vmul.f32 %v3429_v3, %v1861_v57 }
0x15dc   :  { %1865 = vrot.lane.b32.xlu1 %v1863_v61, %s3523_s2 }
0x164e   :  { %v1866_v18 = vpop.permute.xlu1 %1865 }
0x164f   :  { %v1868_v55 = vadd.f32 %v1866_v18, %v1858_v15 }
0x1651   :  { %3430 = vtanh.f32 %v1868_v55 }
0x1652   :  { %3432 = vpow2.f32 %v2869_v0 }
0x165b   :  { %v3431_v9 = vpop.eup %3430 }
0x165c   :  { %1871 = vrot.lane.b32.xlu0 %v3431_v9, %s3523_s2  ;;  %v3433_v4 = vpop.eup %3432 }
0x165d   :  { %v1852_v5 = vadd.f32 1.0, %v3433_v4 }
0x165f   :  { %3434 = vrcp.f32 %v1852_v5 }
0x1669   :  { %v3435_v63 = vpop.eup %3434 }
0x16ce   :  { %v1872_v23 = vpop.permute.xlu0 %1871 }
0x16cf   :  { %v1874_v6 = vmul.f32 %v3435_v63, %v1872_v23 }
0x16d1   :  { %2870 = vmatmul.mubr.msk.f32.vlgmr.msra.gmra.mrb[14].mxu1 %vm283_vm0, %v1874_v6 }
0x16d2   :  { %3146 = vmatpush1.bf16.msra.mxu1 %v4001_v31  ;;  %2052 = vmatprep.mubr.f32.mxu1 %v3522_v10 }
0x16d3   :  { %3148 = vmatprep.subr.bf16.mxu1 %v4015_v34 }
0x16d6   :  { %3150 = vmatpush1.bf16.msra.mxu1 %v4020_v36 }
0x16d7   :  { %3152 = vmatprep.subr.bf16.mxu1 %v4033_v42 }
0x16da   :  { %3154 = vmatpush1.bf16.msra.mxu1 %v4038_v44 }
0x16db   :  { %3156 = vmatprep.subr.bf16.mxu1 %v4051_v48 }
0x16de   :  { %3158 = vmatpush1.bf16.msra.mxu1 %v4056_v50 }
0x16df   :  { %3160 = vmatprep.subr.bf16.mxu1 %v3996_v1 }
0x17a4   :  { %v1946_v8 = vpop.f32.mrb[14].mxu1 }
0x17a5   :  { %v1951_v56 = vadd.f32 %v1946_v8, %v815_v17  ;;  %v1948_v16 = vpop.f32.mrb[15].mxu1 }
0x17a6   :  { %v1952_v13 = vadd.f32 %v1948_v16, %v817_v7  ;;  %v827_v16 = vadd.f32 %v4168_v62, %v4199_v46 }
0x17a7   :  { %v2871_v40 = vmul.f32 -1.442695, %v1951_v56 }
0x17a8   :  { %3436 = vtanh.f32 %v1952_v13  ;;  %v2872_v52 = vmul.f32 -1.442695, %v1952_v13  ;;  %v829_v13 = vadd.f32 %v4170_v25, %v4193_v37 }
0x17a9   :  { %3438 = vpow2.f32 %v2871_v40 }
0x17b2   :  { %v3437_v14 = vpop.eup %3436 }
0x17b3   :  { %1968 = vrot.lane.b32.xlu1 %v3437_v14, %s3523_s2  ;;  %v3439_v41 = vpop.eup %3438 }
0x17b4   :  { %v1959_v43 = vadd.f32 1.0, %v3439_v41 }
0x17b6   :  { %3440 = vrcp.f32 %v1959_v43 }
0x17c0   :  { %v3441_v45 = vpop.eup %3440 }
0x17c1   :  { %v1966_v20 = vmul.f32 %v3441_v45, %v1868_v55 }
0x1825   :  { %v1969_v2 = vpop.permute.xlu1 %1968 }
0x1826   :  { %v1971_v39 = vmul.f32 %v3441_v45, %v1969_v2 }
0x1828   :  { %1973 = vrot.lane.b32.xlu0 %v1971_v39, %s3523_s2 }
0x189a   :  { %v1974_v21 = vpop.permute.xlu0 %1973 }
0x189b   :  { %v1976_v49 = vadd.f32 %v1974_v21, %v1966_v20 }
0x189d   :  { %3442 = vtanh.f32 %v1976_v49 }
0x189e   :  { %3444 = vpow2.f32 %v2872_v52 }
0x18a7   :  { %v3443_v47 = vpop.eup %3442 }
0x18a8   :  { %1979 = vrot.lane.b32.xlu1 %v3443_v47, %s3523_s2  ;;  %v3445_v51 = vpop.eup %3444 }
0x18a9   :  { %v1960_v38 = vadd.f32 1.0, %v3445_v51 }
0x18ab   :  { %3446 = vrcp.f32 %v1960_v38 }
0x18b5   :  { %v3447_v11 = vpop.eup %3446 }
0x191a   :  { %v1980_v12 = vpop.permute.xlu1 %1979 }
0x191b   :  { %v1982_v58 = vmul.f32 %v3447_v11, %v1980_v12 }
0x191d   :  { %2873 = vmatmul.mubr.msk.f32.vlgmr.msra.gmra.mrb[16].mxu1 %vm283_vm0, %v1982_v58 }
0x191e   :  { %3162 = vmatpush1.bf16.msra.mxu1 %v4001_v31  ;;  %2160 = vmatprep.mubr.f32.mxu1 %v3522_v10 }
0x191f   :  { %3164 = vmatprep.subr.bf16.mxu1 %v4015_v34 }
0x1922   :  { %3166 = vmatpush1.bf16.msra.mxu1 %v4020_v36 }
0x1923   :  { %3168 = vmatprep.subr.bf16.mxu1 %v4033_v42 }
0x1926   :  { %3170 = vmatpush1.bf16.msra.mxu1 %v4038_v44 }
0x1927   :  { %3172 = vmatprep.subr.bf16.mxu1 %v4051_v48 }
0x192a   :  { %3174 = vmatpush1.bf16.msra.mxu1 %v4056_v50 }
0x192b   :  { %3176 = vmatprep.subr.bf16.mxu1 %v3996_v1 }
0x19f0   :  { %v2054_v53 = vpop.f32.mrb[16].mxu1 }
0x19f1   :  { %v2059_v60 = vadd.f32 %v2054_v53, %v821_v54  ;;  %v2056_v3 = vpop.f32.mrb[17].mxu1  ;;  %v833_v53 = vadd.f32 %v4172_v26, %v4199_v46 }
0x19f2   :  { %v2060_v57 = vadd.f32 %v2056_v3, %v823_v59 }
0x19f3   :  { %v2874_v15 = vmul.f32 -1.442695, %v2059_v60  ;;  %v835_v60 = vadd.f32 %v4174_v27, %v4193_v37 }
0x19f4   :  { %3448 = vtanh.f32 %v2060_v57  ;;  %v2875_v23 = vmul.f32 -1.442695, %v2060_v57 }
0x19f5   :  { %3450 = vpow2.f32 %v2874_v15 }
0x19fe   :  { %v3449_v61 = vpop.eup %3448 }
0x19ff   :  { %2076 = vrot.lane.b32.xlu0 %v3449_v61, %s3523_s2  ;;  %v3451_v18 = vpop.eup %3450 }
0x1a00   :  { %v2067_v55 = vadd.f32 1.0, %v3451_v18 }
0x1a02   :  { %3452 = vrcp.f32 %v2067_v55 }
0x1a0c   :  { %v3453_v9 = vpop.eup %3452 }
0x1a0d   :  { %v2074_v22 = vmul.f32 %v3453_v9, %v1976_v49 }
0x1a71   :  { %v2077_v0 = vpop.permute.xlu0 %2076 }
0x1a72   :  { %v2079_v4 = vmul.f32 %v3453_v9, %v2077_v0 }
0x1a74   :  { %2081 = vrot.lane.b32.xlu1 %v2079_v4, %s3523_s2 }
0x1ae6   :  { %v2082_v24 = vpop.permute.xlu1 %2081 }
0x1ae7   :  { %v2084_v5 = vadd.f32 %v2082_v24, %v2074_v22 }
0x1ae9   :  { %3454 = vtanh.f32 %v2084_v5 }
0x1aea   :  { %3456 = vpow2.f32 %v2875_v23 }
0x1af3   :  { %v3455_v63 = vpop.eup %3454 }
0x1af4   :  { %2087 = vrot.lane.b32.xlu0 %v3455_v63, %s3523_s2  ;;  %v3457_v6 = vpop.eup %3456 }
0x1af5   :  { %v2068_v17 = vadd.f32 1.0, %v3457_v6 }
0x1af7   :  { %3458 = vrcp.f32 %v2068_v17 }
0x1b01   :  { %v3459_v7 = vpop.eup %3458 }
0x1b66   :  { %v2088_v8 = vpop.permute.xlu0 %2087 }
0x1b67   :  { %v2090_v56 = vmul.f32 %v3459_v7, %v2088_v8 }
0x1b69   :  { %2876 = vmatmul.mubr.msk.f32.vlgmr.msra.gmra.mrb[18].mxu1 %vm283_vm0, %v2090_v56 }
0x1b6a   :  { %3178 = vmatpush1.bf16.msra.mxu1 %v4001_v31  ;;  %2268 = vmatprep.mubr.f32.mxu1 %v3522_v10 }
0x1b6b   :  { %3180 = vmatprep.subr.bf16.mxu1 %v4015_v34 }
0x1b6e   :  { %3182 = vmatpush1.bf16.msra.mxu1 %v4020_v36 }
0x1b6f   :  { %3184 = vmatprep.subr.bf16.mxu1 %v4033_v42 }
0x1b72   :  { %3186 = vmatpush1.bf16.msra.mxu1 %v4038_v44 }
0x1b73   :  { %3188 = vmatprep.subr.bf16.mxu1 %v4051_v48 }
0x1b76   :  { %3190 = vmatpush1.bf16.msra.mxu1 %v4056_v50 }
0x1b77   :  { %3192 = vmatprep.subr.bf16.mxu1 %v3996_v1 }
0x1c3c   :  { %v2162_v14 = vpop.f32.mrb[18].mxu1 }
0x1c3d   :  { %v2167_v40 = vadd.f32 %v2162_v14, %v827_v16  ;;  %v2164_v41 = vpop.f32.mrb[19].mxu1  ;;  %v839_v16 = vadd.f32 %v4176_v28, %v4199_v46 }
0x1c3e   :  { %v2168_v43 = vadd.f32 %v2164_v41, %v829_v13  ;;  %v841_v13 = vadd.f32 %v4178_v29, %v4193_v37 }
0x1c3f   :  { %v2877_v2 = vmul.f32 -1.442695, %v2167_v40 }
0x1c40   :  { %3460 = vtanh.f32 %v2168_v43  ;;  %v2878_v38 = vmul.f32 -1.442695, %v2168_v43 }
0x1c41   :  { %3462 = vpow2.f32 %v2877_v2 }
0x1c4a   :  { %v3461_v45 = vpop.eup %3460 }
0x1c4b   :  { %2184 = vrot.lane.b32.xlu1 %v3461_v45, %s3523_s2  ;;  %v3463_v39 = vpop.eup %3462 }
0x1c4c   :  { %v2175_v20 = vadd.f32 1.0, %v3463_v39 }
0x1c4e   :  { %3464 = vrcp.f32 %v2175_v20 }
0x1c58   :  { %v3465_v21 = vpop.eup %3464 }
0x1c59   :  { %v2182_v62 = vmul.f32 %v3465_v21, %v2084_v5 }
0x1cbd   :  { %v2185_v49 = vpop.permute.xlu1 %2184 }
0x1cbe   :  { %v2187_v47 = vmul.f32 %v3465_v21, %v2185_v49 }
0x1cc0   :  { %2189 = vrot.lane.b32.xlu0 %v2187_v47, %s3523_s2 }
0x1d32   :  { %v2190_v25 = vpop.permute.xlu0 %2189 }
0x1d33   :  { %v2192_v52 = vadd.f32 %v2190_v25, %v2182_v62 }
0x1d35   :  { %3466 = vtanh.f32 %v2192_v52 }
0x1d36   :  { %3468 = vpow2.f32 %v2878_v38 }
0x1d3f   :  { %v3467_v51 = vpop.eup %3466 }
0x1d40   :  { %2195 = vrot.lane.b32.xlu1 %v3467_v51, %s3523_s2  ;;  %v3469_v11 = vpop.eup %3468 }
0x1d41   :  { %v2176_v12 = vadd.f32 1.0, %v3469_v11 }
0x1d43   :  { %3470 = vrcp.f32 %v2176_v12 }
0x1d4d   :  { %v3471_v58 = vpop.eup %3470 }
0x1db2   :  { %v2196_v54 = vpop.permute.xlu1 %2195 }
0x1db3   :  { %v2198_v59 = vmul.f32 %v3471_v58, %v2196_v54  ;;  %v845_v58 = vadd.f32 %v4180_v30, %v4199_v46 }
0x1db5   :  { %2879 = vmatmul.mubr.msk.f32.vlgmr.msra.gmra.mrb[20].mxu1 %vm283_vm0, %v2198_v59 }
0x1db6   :  { %3194 = vmatpush1.bf16.msra.mxu1 %v4001_v31  ;;  %2376 = vmatprep.mubr.f32.mxu1 %v3522_v10 }
0x1db7   :  { %3196 = vmatprep.subr.bf16.mxu1 %v4015_v34 }
0x1dba   :  { %3198 = vmatpush1.bf16.msra.mxu1 %v4020_v36 }
0x1dbb   :  { %3200 = vmatprep.subr.bf16.mxu1 %v4033_v42 }
0x1dbe   :  { %3202 = vmatpush1.bf16.msra.mxu1 %v4038_v44 }
0x1dbf   :  { %3204 = vmatprep.subr.bf16.mxu1 %v4051_v48 }
0x1dc2   :  { %3206 = vmatpush1.bf16.msra.mxu1 %v4056_v50 }
0x1dc3   :  { %3208 = vmatprep.subr.bf16.mxu1 %v3996_v1 }
0x1e88   :  { %v2270_v3 = vpop.f32.mrb[20].mxu1 }
0x1e89   :  { %v2275_v57 = vadd.f32 %v2270_v3, %v833_v53  ;;  %v2272_v61 = vpop.f32.mrb[21].mxu1 }
0x1e8a   :  { %v2276_v15 = vadd.f32 %v2272_v61, %v835_v60 }
0x1e8b   :  { %v2880_v55 = vmul.f32 -1.442695, %v2275_v57 }
0x1e8c   :  { %3472 = vtanh.f32 %v2276_v15  ;;  %v2881_v23 = vmul.f32 -1.442695, %v2276_v15 }
0x1e8d   :  { %3474 = vpow2.f32 %v2880_v55 }
0x1e96   :  { %v3473_v18 = vpop.eup %3472 }
0x1e97   :  { %2292 = vrot.lane.b32.xlu0 %v3473_v18, %s3523_s2  ;;  %v3475_v9 = vpop.eup %3474 }
0x1e98   :  { %v2283_v0 = vadd.f32 1.0, %v3475_v9 }
0x1e9a   :  { %3476 = vrcp.f32 %v2283_v0 }
0x1ea4   :  { %v3477_v4 = vpop.eup %3476 }
0x1ea5   :  { %v2290_v26 = vmul.f32 %v3477_v4, %v2192_v52 }
0x1f09   :  { %v2293_v22 = vpop.permute.xlu0 %2292 }
0x1f0a   :  { %v2295_v24 = vmul.f32 %v3477_v4, %v2293_v22  ;;  %v851_v22 = vadd.f32 %v4184_v33, %v4199_v46  ;;  %v2631_v33 = vld [vmem:[%s4502_s8] sm:$0xff] }
0x1f0c   :  { %2297 = vrot.lane.b32.xlu1 %v2295_v24, %s3523_s2  ;;  %v853_v24 = vadd.f32 %v4189_v35, %v4193_v37  ;;  %v2632_v35 = vld [vmem:[%s4502_s8 + $0x8] sm:$0xff] }
0x1f0d   :  { %v3240_v46 = vpack.c.bf16 %v2632_v35, %v2631_v33 }
0x1f0f   :  { %3241 = vmatpush3.bf16.msra.mxu0 %v3240_v46 }
0x1f10   :  { %3242 = vmatprep.subr.bf16.mxu0 %v3521_v19 }
0x1f7e   :  { %v2298_v27 = vpop.permute.xlu1 %2297 }
0x1f7f   :  { %v2300_v5 = vadd.f32 %v2298_v27, %v2290_v26 }
0x1f81   :  { %3478 = vtanh.f32 %v2300_v5 }
0x1f82   :  { %3480 = vpow2.f32 %v2881_v23 }
0x1f8b   :  { %v3479_v63 = vpop.eup %3478 }
0x1f8c   :  { %2303 = vrot.lane.b32.xlu0 %v3479_v63, %s3523_s2  ;;  %v3481_v6 = vpop.eup %3480 }
0x1f8d   :  { %v2284_v17 = vadd.f32 1.0, %v3481_v6 }
0x1f8f   :  { %3482 = vrcp.f32 %v2284_v17 }
0x1f99   :  { %v3483_v7 = vpop.eup %3482 }
0x1ffe   :  { %v2304_v8 = vpop.permute.xlu0 %2303 }
0x1fff   :  { %v2306_v56 = vmul.f32 %v3483_v7, %v2304_v8 }
0x2001   :  { %2882 = vmatmul.mubr.msk.f32.vlgmr.msra.gmra.mrb[22].mxu1 %vm283_vm0, %v2306_v56 }
0x2002   :  { %3210 = vmatpush1.bf16.msra.mxu1 %v4001_v31  ;;  %2484 = vmatprep.mubr.f32.mxu1 %v3522_v10 }
0x2003   :  { %3212 = vmatprep.subr.bf16.mxu1 %v4015_v34 }
0x2006   :  { %3214 = vmatpush1.bf16.msra.mxu1 %v4020_v36 }
0x2007   :  { %3216 = vmatprep.subr.bf16.mxu1 %v4033_v42 }
0x200a   :  { %3218 = vmatpush1.bf16.msra.mxu1 %v4038_v44 }
0x200b   :  { %3220 = vmatprep.subr.bf16.mxu1 %v4051_v48 }
0x200e   :  { %3222 = vmatpush1.bf16.msra.mxu1 %v4056_v50 }
0x200f   :  { %3224 = vmatprep.subr.bf16.mxu1 %v3996_v1 }
0x20d4   :  { %v2378_v14 = vpop.f32.mrb[22].mxu1 }
0x20d5   :  { %v2383_v40 = vadd.f32 %v2378_v14, %v839_v16  ;;  %v2380_v41 = vpop.f32.mrb[23].mxu1 }
0x20d6   :  { %v2384_v43 = vadd.f32 %v2380_v41, %v841_v13  ;;  %v2634_v13 = vld [vmem:[%s4502_s8 + $0x18] sm:$0xff]  ;;  %v2636_v41 = vld [vmem:[%s4502_s8 + $0x28] sm:$0xff] }
0x20d7   :  { %v2883_v2 = vmul.f32 -1.442695, %v2383_v40  ;;  %v2635_v40 = vld [vmem:[%s4502_s8 + $0x20] sm:$0xff] }
0x20d8   :  { %3484 = vtanh.f32 %v2384_v43  ;;  %v2884_v25 = vmul.f32 -1.442695, %v2384_v43  ;;  %v3246_v43 = vpack.c.bf16 %v2636_v41, %v2635_v40 }
0x20d9   :  { %3486 = vpow2.f32 %v2883_v2  ;;  %v2638_v2 = vld [vmem:[%s4502_s8 + $0x38] sm:$0xff] }
0x20e2   :  { %v3485_v45 = vpop.eup %3484 }
0x20e3   :  { %2400 = vrot.lane.b32.xlu1 %v3485_v45, %s3523_s2  ;;  %v3487_v39 = vpop.eup %3486  ;;  %v2637_v45 = vld [vmem:[%s4502_s8 + $0x30] sm:$0xff] }
0x20e4   :  { %v2391_v20 = vadd.f32 1.0, %v3487_v39  ;;  %v3249_v39 = vpack.c.bf16 %v2638_v2, %v2637_v45 }
0x20e6   :  { %3488 = vrcp.f32 %v2391_v20 }
0x20f0   :  { %v3489_v1 = vpop.eup %3488 }
0x20f1   :  { %v2398_v28 = vmul.f32 %v3489_v1, %v2300_v5 }
0x2155   :  { %v2401_v21 = vpop.permute.xlu1 %2400 }
0x2156   :  { %v2403_v49 = vmul.f32 %v3489_v1, %v2401_v21 }
0x2158   :  { %2405 = vrot.lane.b32.xlu0 %v2403_v49, %s3523_s2 }
0x21ca   :  { %v2406_v29 = vpop.permute.xlu0 %2405 }
0x21cb   :  { %v2408_v47 = vadd.f32 %v2406_v29, %v2398_v28 }
0x21cd   :  { %3490 = vtanh.f32 %v2408_v47 }
0x21ce   :  { %3492 = vpow2.f32 %v2884_v25  ;;  %v2721_v25 = vld [vmem:[%s4503_s10 + $0x8] sm:$0xff] }
0x21d7   :  { %v3491_v62 = vpop.eup %3490 }
0x21d8   :  { %2411 = vrot.lane.b32.xlu1 %v3491_v62, %s3523_s2  ;;  %v3493_v52 = vpop.eup %3492  ;;  %v2720_v62 = vld [vmem:[%s4503_s10] sm:$0xff] }
0x21d9   :  { %v2392_v51 = vadd.f32 1.0, %v3493_v52 }
0x21db   :  { %3494 = vrcp.f32 %v2392_v51 }
0x21e5   :  { %v3495_v38 = vpop.eup %3494 }
0x224a   :  { %v2412_v11 = vpop.permute.xlu1 %2411 }
0x224b   :  { %v2414_v12 = vmul.f32 %v3495_v38, %v2412_v11  ;;  %v3252_v38 = vpack.c.bf16 %v2721_v25, %v2720_v62 }
0x224d   :  { %2885 = vmatmul.mubr.msk.f32.vlgmr.msra.gmra.mrb[24].mxu1 %vm283_vm0, %v2414_v12  ;;  %v2722_v12 = vld [vmem:[%s4503_s10 + $0x10] sm:$0xff] }
0x224e   :  { %3226 = vmatpush1.bf16.msra.mxu1 %v4001_v31  ;;  %2592 = vmatprep.mubr.f32.mxu1 %v3522_v10  ;;  %v847_v31 = vadd.f32 %v4182_v32, %v4193_v37  ;;  %v2633_v37 = vld [vmem:[%s4502_s8 + $0x10] sm:$0xff] }
0x224f   :  { %3228 = vmatprep.subr.bf16.mxu1 %v4015_v34  ;;  %v3243_v14 = vpack.c.bf16 %v2634_v13, %v2633_v37 }
0x2251   :  { %3244 = vmatpush3.bf16.msra.mxu0 %v3243_v14 }
0x2252   :  { %3230 = vmatpush1.bf16.msra.mxu1 %v4020_v36  ;;  %3245 = vmatprep.subr.bf16.mxu0 %v3521_v19 }
0x2253   :  { %3232 = vmatprep.subr.bf16.mxu1 %v4033_v42 }
0x2255   :  { %3247 = vmatpush3.bf16.msra.mxu0 %v3246_v43 }
0x2256   :  { %3234 = vmatpush1.bf16.msra.mxu1 %v4038_v44  ;;  %3248 = vmatprep.subr.bf16.mxu0 %v3521_v19 }
0x2257   :  { %3236 = vmatprep.subr.bf16.mxu1 %v4051_v48 }
0x2259   :  { %3250 = vmatpush3.bf16.msra.mxu0 %v3249_v39 }
0x225a   :  { %3238 = vmatpush1.bf16.msra.mxu1 %v4056_v50  ;;  %3251 = vmatprep.subr.bf16.mxu0 %v3521_v19 }
0x2320   :  { %v2486_v54 = vpop.f32.mrb[24].mxu1 }
0x2321   :  { %v2491_v59 = vadd.f32 %v2486_v54, %v845_v58  ;;  %v2488_v53 = vpop.f32.mrb[25].mxu1  ;;  %v2723_v58 = vld [vmem:[%s4503_s10 + $0x18] sm:$0xff]  ;;  %v17_v54 = vstv %s4504_s11 }
0x2322   :  { %v2492_v34 = vadd.f32 %v2488_v53, %v847_v31  ;;  %v3255_v31 = vpack.c.bf16 %v2723_v58, %v2722_v12  ;;  %18 = vst [vmem:[#allocation4] sm:$0x1] %v17_v54 }
0x2323   :  { %v2886_v42 = vmul.f32 -1.442695, %v2491_v59 }
0x2324   :  { %3496 = vtanh.f32 %v2492_v34  ;;  %v2887_v15 = vmul.f32 -1.442695, %v2492_v34 }
0x2325   :  { %3498 = vpow2.f32 %v2886_v42 }
0x232e   :  { %v3497_v36 = vpop.eup %3496 }
0x232f   :  { %2508 = vrot.lane.b32.xlu0 %v3497_v36, %s3523_s2  ;;  %v3499_v44 = vpop.eup %3498  ;;  %v2893_v36 = vld [vmem:[#allocation4] ss:$0 sm:$0xff] }
0x2330   :  { %v2499_v48 = vadd.f32 1.0, %v3499_v44 }
0x2332   :  { %3500 = vrcp.f32 %v2499_v48 }
0x233c   :  { %v3501_v50 = vpop.eup %3500 }
0x233d   :  { %v2506_v30 = vmul.f32 %v3501_v50, %v2408_v47 }
0x23a1   :  { %v2509_v60 = vpop.permute.xlu0 %2508 }
0x23a2   :  { %v2511_v3 = vmul.f32 %v3501_v50, %v2509_v60 }
0x23a4   :  { %2513 = vrot.lane.b32.xlu1 %v2511_v3, %s3523_s2 }
0x2416   :  { %v2514_v32 = vpop.permute.xlu1 %2513 }
0x2417   :  { %v2516_v57 = vadd.f32 %v2514_v32, %v2506_v30 }
0x2419   :  { %3502 = vtanh.f32 %v2516_v57 }
0x241a   :  { %3504 = vpow2.f32 %v2887_v15 }
0x2423   :  { %v3503_v61 = vpop.eup %3502 }
0x2424   :  { %2519 = vrot.lane.b32.xlu0 %v3503_v61, %s3523_s2  ;;  %v3505_v18 = vpop.eup %3504 }
0x2425   :  { %v2500_v55 = vadd.f32 1.0, %v3505_v18 }
0x2427   :  { %3506 = vrcp.f32 %v2500_v55 }
0x2431   :  { %v3507_v9 = vpop.eup %3506 }
0x2496   :  { %v2520_v0 = vpop.permute.xlu0 %2519 }
0x2497   :  { %v2522_v4 = vmul.f32 %v3507_v9, %v2520_v0 }
0x2499   :  { %2888 = vmatmul.mubr.msk.f32.vlgmr.msra.gmra.mrb[26].mxu1 %vm283_vm0, %v2522_v4 }
0x256c   :  { %v2594_v26 = vpop.f32.mrb[26].mxu1 }
0x256d   :  { %v2599_v27 = vadd.f32 %v2594_v26, %v851_v22  ;;  %v2596_v5 = vpop.f32.mrb[27].mxu1 }
0x256e   :  { %v2600_v63 = vadd.f32 %v2596_v5, %v853_v24 }
0x256f   :  { %v2889_v6 = vmul.f32 -1.442695, %v2599_v27 }
0x2570   :  { %3508 = vtanh.f32 %v2600_v63  ;;  %v2890_v28 = vmul.f32 -1.442695, %v2600_v63 }
0x2571   :  { %3510 = vpow2.f32 %v2889_v6 }
0x257a   :  { %v3509_v23 = vpop.eup %3508 }
0x257b   :  { %2616 = vrot.lane.b32.xlu1 %v3509_v23, %s3523_s2  ;;  %v3511_v17 = vpop.eup %3510 }
0x257c   :  { %v2607_v7 = vadd.f32 1.0, %v3511_v17 }
0x257e   :  { %3512 = vrcp.f32 %v2607_v7 }
0x2588   :  { %v3513_v8 = vpop.eup %3512 }
0x2589   :  { %v2614_v20 = vmul.f32 %v3513_v8, %v2516_v57 }
0x25ed   :  { %v2617_v56 = vpop.permute.xlu1 %2616 }
0x25ee   :  { %v2619_v16 = vmul.f32 %v3513_v8, %v2617_v56 }
0x25f0   :  { %2621 = vrot.lane.b32.xlu0 %v2619_v16, %s3523_s2 }
0x2662   :  { %v2622_v1 = vpop.permute.xlu0 %2621 }
0x2663   :  { %v2624_v21 = vadd.f32 %v2622_v1, %v2614_v20 }
0x2665   :  { %3514 = vtanh.f32 %v2624_v21 }
0x2666   :  { %3516 = vpow2.f32 %v2890_v28 }
0x266f   :  { %v3515_v49 = vpop.eup %3514 }
0x2670   :  { %2627 = vrot.lane.b32.xlu1 %v3515_v49, %s3523_s2  ;;  %v3517_v29 = vpop.eup %3516 }
0x2671   :  { %v2608_v47 = vadd.f32 1.0, %v3517_v29 }
0x2673   :  { %3518 = vrcp.f32 %v2608_v47 }
0x267d   :  { %v3519_v52 = vpop.eup %3518 }
0x26e2   :  { %v2628_v51 = vpop.permute.xlu1 %2627 }
0x26e3   :  { %v2630_v11 = vmul.f32 %v3519_v52, %v2628_v51 }
0x26e5   :  { %2926 = vmatmul.mubr.msk.f32.vlgmr.msra.gmra.mrb[64].mxu0 %vm283_vm0, %v2630_v11 }
0x26e6   :  { %3253 = vmatpush3.bf16.msra.mxu0 %v3252_v38  ;;  %2936 = vmatprep.mubr.msk.f32.mxu0 %vm3524_vm2, %v3522_v10  ;;  %v2891_v10 = vld [vmem:[%s4505_s9] ss:$0 sm:$0xff] }
0x26e7   :  { %3254 = vmatprep.subr.bf16.mxu0 %v3521_v19 }
0x26ea   :  { %3256 = vmatpush3.bf16.msra.mxu0 %v3255_v31 }
0x27b8   :  { %v2715_v19 = vpop.f32.mrb[64].mxu0 }
0x27b9   :  { %v2716_v59 = vadd.f32 %v2891_v10, %v2715_v19  ;;  %v2927_v53 = vpop.f32.mrb[65].mxu0 }
0x27bb   :  { %v2719_v34 = vmax.f32 %v2716_v59, 0.0 }
0x27bd   :  { %2937 = vmatmul.mubr.msk.f32.vlgmr.msra.gmra.mrb[66].mxu0 %vm645_vm1, %v2719_v34 }
0x2890   :  { %v2800_v42 = vpop.f32.mrb[66].mxu0 }
0x2891   :  { %v2801_v44 = vadd.f32 %v2893_v36, %v2800_v42  ;;  %v2938_v48 = vpop.f32.mrb[67].mxu0 }
0x2893   :  { %2805 = vst.msk [vmem:[%s4506_s12] sm:$0xff] %vm2804_vm3, %v2801_v44 }

</bundles_post_ra>
